<compile_context>
chip_gen: v5e
topology: v5e:2x2
jax: 0.10.0
libtpu: 0.0.40
codegen_flags: <defaults>
</compile_context>

<pallas_src>
import math
from functools import partial

import jax
import jax.numpy as jnp
import numpy as np
from jax import lax
from jax.experimental import pallas as pl
from jax.experimental.pallas import tpu as pltpu


def _round_up(n, m):
    return (n + m - 1) // m * m


# ---------------------------------- kernel -----------------------------------

def _encoder_stack_kernel(H, D, E_real,
                          x_ref, ln0g, ln0b, wqkv, bqkv, wo, bo,
                          ln1g, ln1b, w1, b1, w2, b2, lnfg, lnfb,
                          o_ref, carry):
    """One (batch-block, layer) grid step of the pre-LN encoder stack."""
    l = pl.program_id(1)
    Bt, S, E_pad = x_ref.shape
    M = Bt * S
    scaling = float(D) ** -0.5
    inv_e = 1.0 / float(E_real)

    # Lane-validity mask so LayerNorm stats only cover the real embed dim.
    if E_pad != E_real:
        lane = lax.broadcasted_iota(jnp.int32, (1, E_pad), 1)
        lane_mask = (lane < E_real).astype(jnp.float32)
    else:
        lane_mask = None

    def layer_norm(x, g, b, eps=1e-5):
        mu = jnp.sum(x, axis=-1, keepdims=True) * inv_e
        xc = x - mu
        if lane_mask is not None:
            xc = xc * lane_mask                 # padded channels contribute 0
        var = jnp.sum(xc * xc, axis=-1, keepdims=True) * inv_e
        return xc * lax.rsqrt(var + eps) * g + b

    # Load this batch block's activation into the VMEM carry on the first layer.
    @pl.when(l == 0)
    def _():
        carry[...] = x_ref[...].reshape(M, E_pad)

    x = carry[...]

    # --------------------- self-attention block (pre-LN) ---------------------
    residual = x
    xn = layer_norm(x, ln0g[...], ln0b[...])
    qkv = jnp.dot(xn.astype(jnp.bfloat16), wqkv[...],
                  preferred_element_type=jnp.float32) + bqkv[...]        # (M, 3E)
    qkv3 = qkv.reshape(Bt, S, 3 * E_pad)       # leading-dim split only (lane dim kept)

    attn = jnp.zeros((M, E_pad), jnp.float32)
    for h in range(H):                          # static unroll; heads never mix
        lo = h * D
        qh = (qkv3[:, :, lo:lo + D] * scaling).astype(jnp.bfloat16)
        kh = qkv3[:, :, E_pad + lo:E_pad + lo + D].astype(jnp.bfloat16)
        vh = qkv3[:, :, 2 * E_pad + lo:2 * E_pad + lo + D].astype(jnp.bfloat16)
        # (Bt,S,D) x (Bt,S,D) -> (Bt,S,S): minimum MXU flops, no block-diag mask.
        sc = lax.dot_general(qh, kh, (((2,), (2,)), ((0,), (0,))),
                             preferred_element_type=jnp.float32)
        sc = sc - jnp.max(sc, axis=-1, keepdims=True)
        p = jnp.exp(sc)
        p = p * pl.reciprocal(jnp.sum(p, axis=-1, keepdims=True), approx=True)
        ctx = lax.dot_general(p.astype(jnp.bfloat16), vh,
                              (((2,), (1,)), ((0,), (0,))),
                              preferred_element_type=jnp.float32)        # (Bt,S,D)
        # Head merge folded into the out-projection (no lane concatenate).
        attn = attn + jnp.dot(ctx.reshape(M, D).astype(jnp.bfloat16),
                              wo[lo:lo + D, :],
                              preferred_element_type=jnp.float32)
    x = residual + attn + bo[...]

    # ----------------------- feed-forward block (pre-LN) ---------------------
    residual = x
    xn = layer_norm(x, ln1g[...], ln1b[...])
    h1 = jnp.maximum(jnp.dot(xn.astype(jnp.bfloat16), w1[...],
                             preferred_element_type=jnp.float32) + b1[...], 0.0)
    h2 = jnp.dot(h1.astype(jnp.bfloat16), w2[...],
                 preferred_element_type=jnp.float32) + b2[...]
    x = residual + h2
    carry[...] = x

    # ---------------- final LayerNorm fused into the last layer --------------
    @pl.when(l == pl.num_programs(1) - 1)
    def _():
        y = layer_norm(x, lnfg[...], lnfb[...])
        o_ref[...] = y.reshape(Bt, S, E_pad).astype(o_ref.dtype)


# ------------------------------ pallas wrapper --------------------------------

def encoder_stack(x3d, params, num_heads):
    """x3d: (B, S, E) f32 activations (already scaled + pos-embedded)."""
    B, S, E = x3d.shape
    L = params['w_qkv'].shape[0]
    D = E // num_heads
    E_pad = _round_up(E, 128)
    F_pad = _round_up(4 * E, 128)

    def pad2(a, r, c):
        cfg = [(0, 0)] * (a.ndim - 2) + [(0, r - a.shape[-2]), (0, c - a.shape[-1])]
        return jnp.pad(a, cfg)

    # Re-pack QKV so each of q / k / v starts at a 128-aligned column slab.
    wq = pad2(params['w_qkv'][:, :, :E], E_pad, E_pad)
    wk = pad2(params['w_qkv'][:, :, E:2 * E], E_pad, E_pad)
    wv = pad2(params['w_qkv'][:, :, 2 * E:], E_pad, E_pad)
    w_qkv = jnp.concatenate([wq, wk, wv], axis=-1)               # (L, E_pad, 3E_pad)
    bq = pad2(params['b_qkv'][:, :, :E], 1, E_pad)
    bk = pad2(params['b_qkv'][:, :, E:2 * E], 1, E_pad)
    bv = pad2(params['b_qkv'][:, :, 2 * E:], 1, E_pad)
    b_qkv = jnp.concatenate([bq, bk, bv], axis=-1)               # (L, 1, 3E_pad)

    wo = pad2(params['wo'], E_pad, E_pad);   bo = pad2(params['bo'], 1, E_pad)
    w1 = pad2(params['w1'], E_pad, F_pad);   b1 = pad2(params['b1'], 1, F_pad)
    w2 = pad2(params['w2'], F_pad, E_pad);   b2 = pad2(params['b2'], 1, E_pad)
    ln0g = pad2(params['ln0_g'], 1, E_pad);  ln0b = pad2(params['ln0_b'], 1, E_pad)
    ln1g = pad2(params['ln1_g'], 1, E_pad);  ln1b = pad2(params['ln1_b'], 1, E_pad)
    lng = pad2(params['ln_g'], 1, E_pad);    lnb = pad2(params['ln_b'], 1, E_pad)
    x_p = pad2(x3d, S, E_pad)                                    # (B, S, E_pad) f32

    # Batch blocking: the largest Bt (dividing B) whose activations fit a ~24 MiB
    # budget, so per-layer weights are streamed from HBM only B/Bt times.
    act_row_bytes = (S * (8 * E_pad + 2 * F_pad) + 2 * S * S) * 4
    Bt = max(1, min(B, (24 << 20) // max(act_row_bytes, 1)))
    while B % Bt:
        Bt -= 1
    nb = B // Bt
    M = Bt * S

    # VMEM budget: double-buffered per-layer weights + activation working set.
    w_layer = (4 * E_pad * E_pad + 2 * E_pad * F_pad) * 2                 # bf16
    misc_layer = (10 * E_pad + 2 * F_pad) * 4
    act_bytes = (5 * Bt * S * E_pad + M * (8 * E_pad + 2 * F_pad)
                 + 2 * Bt * S * S) * 4
    vmem_limit = int(min(max(2 * (w_layer + misc_layer) + act_bytes + (4 << 20),
                             16 << 20), 64 << 20))

    act_spec = pl.BlockSpec((Bt, S, E_pad), lambda b, l: (b, 0, 0))

    def wspec(d1, d2):      # per-layer stacked weights; leading layer dim squeezed
        return pl.BlockSpec((None, d1, d2), lambda b, l: (l, 0, 0))

    def cspec(d1, d2):      # grid-invariant (final LayerNorm) params
        return pl.BlockSpec((d1, d2), lambda b, l: (0, 0))

    out = pl.pallas_call(
        partial(_encoder_stack_kernel, num_heads, D, E),
        out_shape=jax.ShapeDtypeStruct((B, S, E_pad), jnp.float32),
        grid=(nb, L),
        in_specs=[
            act_spec,
            wspec(1, E_pad), wspec(1, E_pad),             # ln0 gamma / beta
            wspec(E_pad, 3 * E_pad), wspec(1, 3 * E_pad), # fused QKV projection
            wspec(E_pad, E_pad), wspec(1, E_pad),         # attention out projection
            wspec(1, E_pad), wspec(1, E_pad),             # ln1 gamma / beta
            wspec(E_pad, F_pad), wspec(1, F_pad),         # fc1
            wspec(F_pad, E_pad), wspec(1, E_pad),         # fc2
            cspec(1, E_pad), cspec(1, E_pad),             # final LayerNorm
        ],
        out_specs=act_spec,
        scratch_shapes=[pltpu.VMEM((M, E_pad), jnp.float32)],
        input_output_aliases={0: 0},
        compiler_params=pltpu.CompilerParams(
            dimension_semantics=("parallel", "arbitrary"),
            vmem_limit_bytes=vmem_limit),
    )(x_p, ln0g, ln0b, w_qkv, b_qkv, wo, bo, ln1g, ln1b, w1, b1, w2, b2, lng, lnb)
    return out[:, :, :E]


# ------------------------------ glue (plain JAX) ------------------------------

def sinusoidal_table(num_embeddings, embedding_dim, padding_idx=0):
    """fairseq/MulT SinusoidalPositionalEmbedding.get_embedding."""
    half = embedding_dim // 2
    emb = math.log(10000.0) / (half - 1)
    freqs = jnp.exp(jnp.arange(half, dtype=jnp.float32) * -emb)
    args = jnp.arange(num_embeddings, dtype=jnp.float32)[:, None] * freqs[None, :]
    table = jnp.concatenate([jnp.sin(args), jnp.cos(args)], axis=1)
    if embedding_dim % 2 == 1:
        table = jnp.concatenate(
            [table, jnp.zeros((num_embeddings, 1), jnp.float32)], axis=1)
    table = table.at[padding_idx].set(0.0)
    return table


def transformer_encoder_forward(params, x_in, num_heads):
    """x_in: (S, B, E) float32, same axis convention as the PyTorch module."""
    S, B, E = x_in.shape

    # embed scale + sinusoidal positional embedding (padding_idx=0 semantics:
    # positions whose channel-0 value is exactly 0 get the zero embedding row).
    x = math.sqrt(E) * x_in
    tokens = jnp.transpose(x_in, (1, 0, 2))[:, :, 0]                  # (B, S)
    table = sinusoidal_table(S + 1, E)
    pos = jnp.where(tokens != 0.0,
                    jnp.arange(1, S + 1, dtype=jnp.int32)[None, :], 0)
    x = x + jnp.transpose(table[pos], (1, 0, 2))                      # (S, B, E)
    # embed_dropout: eval mode -> identity.

    x3d = jnp.transpose(x, (1, 0, 2))                                 # (B, S, E)
    out3d = encoder_stack(x3d, params, num_heads)
    return jnp.transpose(out3d, (1, 0, 2))                            # (S, B, E)


# ------------------------------- parameter init -------------------------------

def _xavier_uniform(key, fan_out, fan_in):
    limit = math.sqrt(6.0 / (fan_in + fan_out))
    return jax.random.uniform(key, (fan_out, fan_in), jnp.float32, -limit, limit)


def init_params(key, E, n_layers):
    """Weights stacked along a leading layer axis; matmul weights stored bf16."""
    w_qkv, wo, w1, w2 = [], [], [], []
    for _ in range(n_layers):
        key, k_in, k_out, k1, k2 = jax.random.split(key, 5)
        w_qkv.append(_xavier_uniform(k_in, 3 * E, E).T)   # (E, 3E)
        wo.append(_xavier_uniform(k_out, E, E).T)         # (E, E)
        w1.append(_xavier_uniform(k1, 4 * E, E).T)        # (E, 4E)
        w2.append(_xavier_uniform(k2, E, 4 * E).T)        # (4E, E)
    L, f32, bf16 = n_layers, jnp.float32, jnp.bfloat16
    return dict(
        ln0_g=jnp.ones((L, 1, E), f32), ln0_b=jnp.zeros((L, 1, E), f32),
        w_qkv=jnp.stack(w_qkv).astype(bf16), b_qkv=jnp.zeros((L, 1, 3 * E), f32),
        wo=jnp.stack(wo).astype(bf16),       bo=jnp.zeros((L, 1, E), f32),
        ln1_g=jnp.ones((L, 1, E), f32), ln1_b=jnp.zeros((L, 1, E), f32),
        w1=jnp.stack(w1).astype(bf16),       b1=jnp.zeros((L, 1, 4 * E), f32),
        w2=jnp.stack(w2).astype(bf16),       b2=jnp.zeros((L, 1, E), f32),
        ln_g=jnp.ones((1, E), f32), ln_b=jnp.zeros((1, E), f32),
    )


# ------------------------------ pure-JAX reference -----------------------------

def _ref_ln(x, g, b, eps=1e-5):
    mu = jnp.mean(x, -1, keepdims=True)
    var = jnp.mean((x - mu) ** 2, -1, keepdims=True)
    return (x - mu) / jnp.sqrt(var + eps) * g + b


def reference_forward(params, x_in, num_heads):
    S, B, E = x_in.shape
    D = E // num_heads
    x = math.sqrt(E) * x_in
    tokens = jnp.transpose(x_in, (1, 0, 2))[:, :, 0]
    table = sinusoidal_table(S + 1, E)
    pos = jnp.where(tokens != 0.0,
                    jnp.arange(1, S + 1, dtype=jnp.int32)[None, :], 0)
    x = x + jnp.transpose(table[pos], (1, 0, 2))
    L = params['w_qkv'].shape[0]
    for l in range(L):
        wqkv = params['w_qkv'][l].astype(jnp.float32)
        wo = params['wo'][l].astype(jnp.float32)
        w1 = params['w1'][l].astype(jnp.float32)
        w2 = params['w2'][l].astype(jnp.float32)
        residual = x
        xn = _ref_ln(x, params['ln0_g'][l], params['ln0_b'][l])
        qkv = xn @ wqkv + params['b_qkv'][l]
        q = qkv[..., :E] * (D ** -0.5)
        k = qkv[..., E:2 * E]
        v = qkv[..., 2 * E:]
        qh = q.reshape(S, B, num_heads, D)
        kh = k.reshape(S, B, num_heads, D)
        vh = v.reshape(S, B, num_heads, D)
        sc = jnp.einsum('qbhd,kbhd->bhqk', qh, kh)
        p = jax.nn.softmax(sc, axis=-1)
        o = jnp.einsum('bhqk,kbhd->qbhd', p, vh).reshape(S, B, E)
        x = residual + (o @ wo + params['bo'][l])
        residual = x
        xn = _ref_ln(x, params['ln1_g'][l], params['ln1_b'][l])
        h = jax.nn.relu(xn @ w1 + params['b1'][l])
        x = residual + (h @ w2 + params['b2'][l])
    return _ref_ln(x, params['ln_g'], params['ln_b'])


# -------------------------------------- main -----------------------------------

if __name__ == "__main__":
    S, B, E, H, L = 8, 2, 32, 4, 2   # seq, batch, embed_dim, heads, layers
    key = jax.random.PRNGKey(0)
    kx, kp = jax.random.split(key)
    x_in = jax.random.normal(kx, (S, B, E), jnp.float32)
    params = init_params(kp, E, L)

    fwd = jax.jit(partial(transformer_encoder_forward, num_heads=H))
    out = jax.block_until_ready(fwd(params, x_in))

    ref = reference_forward(params, x_in, H)
    # Kernel uses bf16 matmul operands (f32 accumulate) + approx reciprocal;
    # reference uses the same (bf16-rounded) weights in f32 arithmetic.
    np.testing.assert_allclose(np.asarray(out), np.asarray(ref),
                               rtol=3e-2, atol=3e-2)
    print("KERNEL_OK")
</pallas_src>

<mosaic_0001>
module attributes {stable_mosaic.version = 11 : i64} {
  func.func @_encoder_stack_kernel(%arg0: i32, %arg1: i32, %arg2: memref<2x8x128xf32, #tpu.memory_space<vmem>>, %arg3: memref<1x1x128xf32, #tpu.memory_space<vmem>>, %arg4: memref<1x1x128xf32, #tpu.memory_space<vmem>>, %arg5: memref<1x128x384xbf16, #tpu.memory_space<vmem>>, %arg6: memref<1x1x384xf32, #tpu.memory_space<vmem>>, %arg7: memref<1x128x128xbf16, #tpu.memory_space<vmem>>, %arg8: memref<1x1x128xf32, #tpu.memory_space<vmem>>, %arg9: memref<1x1x128xf32, #tpu.memory_space<vmem>>, %arg10: memref<1x1x128xf32, #tpu.memory_space<vmem>>, %arg11: memref<1x128x128xbf16, #tpu.memory_space<vmem>>, %arg12: memref<1x1x128xf32, #tpu.memory_space<vmem>>, %arg13: memref<1x128x128xbf16, #tpu.memory_space<vmem>>, %arg14: memref<1x1x128xf32, #tpu.memory_space<vmem>>, %arg15: memref<1x128xf32, #tpu.memory_space<vmem>>, %arg16: memref<1x128xf32, #tpu.memory_space<vmem>>, %arg17: memref<2x8x128xf32, #tpu.memory_space<vmem>>, %arg18: memref<16x128xf32, #tpu.memory_space<vmem>>) attributes {dimension_semantics = [#tpu.dimension_semantics<parallel>, #tpu.dimension_semantics<arbitrary>], iteration_bounds = array<i64: 1, 2>, scalar_prefetch = 0 : i64, scratch_operands = 1 : i64, tpu.core_type = #tpu.core_type<tc>, window_params = [{transform_indices = @transform_0, window_bounds = array<i64: 2, 8, 128>}, {transform_indices = @transform_1, window_bounds = array<i64: 1, 1, 128>}, {transform_indices = @transform_2, window_bounds = array<i64: 1, 1, 128>}, {transform_indices = @transform_3, window_bounds = array<i64: 1, 128, 384>}, {transform_indices = @transform_4, window_bounds = array<i64: 1, 1, 384>}, {transform_indices = @transform_5, window_bounds = array<i64: 1, 128, 128>}, {transform_indices = @transform_6, window_bounds = array<i64: 1, 1, 128>}, {transform_indices = @transform_7, window_bounds = array<i64: 1, 1, 128>}, {transform_indices = @transform_8, window_bounds = array<i64: 1, 1, 128>}, {transform_indices = @transform_9, window_bounds = array<i64: 1, 128, 128>}, {transform_indices = @transform_10, window_bounds = array<i64: 1, 1, 128>}, {transform_indices = @transform_11, window_bounds = array<i64: 1, 128, 128>}, {transform_indices = @transform_12, window_bounds = array<i64: 1, 1, 128>}, {pipeline_mode = #tpu.pipeline_mode<synchronous>, transform_indices = @transform_13, window_bounds = array<i64: 1, 128>}, {pipeline_mode = #tpu.pipeline_mode<synchronous>, transform_indices = @transform_14, window_bounds = array<i64: 1, 128>}, {transform_indices = @transform_15, window_bounds = array<i64: 2, 8, 128>}]} {
    %0 = tpu.iota {dimensions = array<i32: 1>} : vector<1x128xi32>
    %c32_i32 = arith.constant 32 : i32
    %1 = vector.broadcast %c32_i32 : i32 to vector<1x128xi32>
    %2 = arith.cmpi slt, %0, %1 : vector<1x128xi32>
    %3 = arith.extui %2 : vector<1x128xi1> to vector<1x128xi32>
    %4 = arith.sitofp %3 : vector<1x128xi32> to vector<1x128xf32>
    %c0_i32 = arith.constant 0 : i32
    %5 = arith.cmpi eq, %arg1, %c0_i32 : i32
    %6 = arith.extui %5 : i1 to i32
    %c0_i32_0 = arith.constant 0 : i32
    %7 = arith.cmpi ne, %6, %c0_i32_0 : i32
    scf.if %7 {
      %c0_85 = arith.constant 0 : index
      %c0_86 = arith.constant 0 : index
      %c0_87 = arith.constant 0 : index
      %207 = vector.load %arg2[%c0_85, %c0_86, %c0_87] : memref<2x8x128xf32, #tpu.memory_space<vmem>>, vector<2x8x128xf32>
      %208 = vector.shape_cast %207 : vector<2x8x128xf32> to vector<16x128xf32>
      %c0_88 = arith.constant 0 : index
      %c0_89 = arith.constant 0 : index
      %209 = vector.load %arg18[%c0_88, %c0_89] : memref<16x128xf32, #tpu.memory_space<vmem>>, vector<16x128xf32>
      tpu.vector_store %arg18[%c0_88, %c0_89], %208 {strides = array<i32>} : memref<16x128xf32, #tpu.memory_space<vmem>>, vector<16x128xf32>,
    } else {
    }
    %c0 = arith.constant 0 : index
    %c0_1 = arith.constant 0 : index
    %8 = vector.load %arg18[%c0, %c0_1] : memref<16x128xf32, #tpu.memory_space<vmem>>, vector<16x128xf32>
    %c0_2 = arith.constant 0 : index
    %c0_3 = arith.constant 0 : index
    %c0_4 = arith.constant 0 : index
    %9 = vector.load %arg3[%c0_2, %c0_3, %c0_4] : memref<1x1x128xf32, #tpu.memory_space<vmem>>, vector<1x1x128xf32>
    %10 = vector.shape_cast %9 : vector<1x1x128xf32> to vector<1x128xf32>
    %c0_5 = arith.constant 0 : index
    %c0_6 = arith.constant 0 : index
    %c0_7 = arith.constant 0 : index
    %11 = vector.load %arg4[%c0_5, %c0_6, %c0_7] : memref<1x1x128xf32, #tpu.memory_space<vmem>>, vector<1x1x128xf32>
    %12 = vector.shape_cast %11 : vector<1x1x128xf32> to vector<1x128xf32>
    %cst = arith.constant dense<0.000000e+00> : vector<16xf32>
    %13 = vector.multi_reduction <add>, %8, %cst [1] : vector<16x128xf32> to vector<16xf32>
    %14 = vector.shape_cast %13 : vector<16xf32> to vector<16x1xf32>
    %cst_8 = arith.constant 3.125000e-02 : f32
    %15 = vector.broadcast %cst_8 : f32 to vector<16x1xf32>
    %16 = arith.mulf %14, %15 : vector<16x1xf32>
    %17 = vector.broadcast %16 : vector<16x1xf32> to vector<16x128xf32>
    %18 = arith.subf %8, %17 : vector<16x128xf32>
    %19 = vector.broadcast %4 : vector<1x128xf32> to vector<16x128xf32>
    %20 = arith.mulf %18, %19 : vector<16x128xf32>
    %21 = arith.mulf %20, %20 : vector<16x128xf32>
    %cst_9 = arith.constant dense<0.000000e+00> : vector<16xf32>
    %22 = vector.multi_reduction <add>, %21, %cst_9 [1] : vector<16x128xf32> to vector<16xf32>
    %23 = vector.shape_cast %22 : vector<16xf32> to vector<16x1xf32>
    %cst_10 = arith.constant 3.125000e-02 : f32
    %24 = vector.broadcast %cst_10 : f32 to vector<16x1xf32>
    %25 = arith.mulf %23, %24 : vector<16x1xf32>
    %cst_11 = arith.constant 9.99999974E-6 : f32
    %26 = vector.broadcast %cst_11 : f32 to vector<16x1xf32>
    %27 = arith.addf %25, %26 : vector<16x1xf32>
    %28 = math.rsqrt %27 : vector<16x1xf32>
    %29 = vector.broadcast %28 : vector<16x1xf32> to vector<16x128xf32>
    %30 = arith.mulf %20, %29 : vector<16x128xf32>
    %31 = vector.broadcast %10 : vector<1x128xf32> to vector<16x128xf32>
    %32 = arith.mulf %30, %31 : vector<16x128xf32>
    %33 = vector.broadcast %12 : vector<1x128xf32> to vector<16x128xf32>
    %34 = arith.addf %32, %33 : vector<16x128xf32>
    %35 = arith.truncf %34 : vector<16x128xf32> to vector<16x128xbf16>
    %c0_12 = arith.constant 0 : index
    %c0_13 = arith.constant 0 : index
    %c0_14 = arith.constant 0 : index
    %36 = vector.load %arg5[%c0_12, %c0_13, %c0_14] : memref<1x128x384xbf16, #tpu.memory_space<vmem>>, vector<1x128x384xbf16>
    %37 = vector.shape_cast %36 : vector<1x128x384xbf16> to vector<128x384xbf16>
    %cst_15 = arith.constant dense<0.000000e+00> : vector<16x384xf32>
    %38 = tpu.matmul %35, %37, %cst_15 {dimension_numbers = #tpu.dot_dimension_numbers<[1], [0], [0], [1], [0, 0, 1, 1], [], []>} : vector<16x128xbf16>, vector<128x384xbf16>, vector<16x384xf32> -> vector<16x384xf32>
    %c0_16 = arith.constant 0 : index
    %c0_17 = arith.constant 0 : index
    %c0_18 = arith.constant 0 : index
    %39 = vector.load %arg6[%c0_16, %c0_17, %c0_18] : memref<1x1x384xf32, #tpu.memory_space<vmem>>, vector<1x1x384xf32>
    %40 = vector.shape_cast %39 : vector<1x1x384xf32> to vector<1x384xf32>
    %41 = vector.broadcast %40 : vector<1x384xf32> to vector<16x384xf32>
    %42 = arith.addf %38, %41 : vector<16x384xf32>
    %43 = vector.shape_cast %42 : vector<16x384xf32> to vector<2x8x384xf32>
    %cst_19 = arith.constant 0.000000e+00 : f32
    %44 = vector.broadcast %cst_19 : f32 to vector<16x128xf32>
    %45 = vector.extract_strided_slice %43 {offsets = [0, 0, 0], sizes = [2, 8, 8], strides = [1, 1, 1]} : vector<2x8x384xf32> to vector<2x8x8xf32>
    %cst_20 = arith.constant 0.353553385 : f32
    %46 = vector.broadcast %cst_20 : f32 to vector<2x8x8xf32>
    %47 = arith.mulf %45, %46 : vector<2x8x8xf32>
    %48 = arith.truncf %47 : vector<2x8x8xf32> to vector<2x8x8xbf16>
    %49 = vector.extract_strided_slice %43 {offsets = [0, 0, 128], sizes = [2, 8, 8], strides = [1, 1, 1]} : vector<2x8x384xf32> to vector<2x8x8xf32>
    %50 = arith.truncf %49 : vector<2x8x8xf32> to vector<2x8x8xbf16>
    %51 = vector.extract_strided_slice %43 {offsets = [0, 0, 256], sizes = [2, 8, 8], strides = [1, 1, 1]} : vector<2x8x384xf32> to vector<2x8x8xf32>
    %52 = arith.truncf %51 : vector<2x8x8xf32> to vector<2x8x8xbf16>
    %cst_21 = arith.constant dense<0.000000e+00> : vector<2x8x8xf32>
    %53 = tpu.matmul %48, %50, %cst_21 {dimension_numbers = #tpu.dot_dimension_numbers<[2], [2], [1], [1], [0, 0, 0, 1, 1, 1], [0], [0]>} : vector<2x8x8xbf16>, vector<2x8x8xbf16>, vector<2x8x8xf32> -> vector<2x8x8xf32>
    %cst_22 = arith.constant dense<0xFF800000> : vector<2x8xf32>
    %54 = vector.multi_reduction <maximumf>, %53, %cst_22 [2] : vector<2x8x8xf32> to vector<2x8xf32>
    %55 = vector.shape_cast %54 : vector<2x8xf32> to vector<2x8x1xf32>
    %56 = vector.broadcast %55 : vector<2x8x1xf32> to vector<2x8x8xf32>
    %57 = arith.subf %53, %56 : vector<2x8x8xf32>
    %58 = math.exp %57 : vector<2x8x8xf32>
    %cst_23 = arith.constant dense<0.000000e+00> : vector<2x8xf32>
    %59 = vector.multi_reduction <add>, %58, %cst_23 [2] : vector<2x8x8xf32> to vector<2x8xf32>
    %60 = vector.shape_cast %59 : vector<2x8xf32> to vector<2x8x1xf32>
    %61 = tpu.reciprocal %60 {approx = true} : vector<2x8x1xf32> -> vector<2x8x1xf32>
    %62 = vector.broadcast %61 : vector<2x8x1xf32> to vector<2x8x8xf32>
    %63 = arith.mulf %58, %62 : vector<2x8x8xf32>
    %64 = arith.truncf %63 : vector<2x8x8xf32> to vector<2x8x8xbf16>
    %cst_24 = arith.constant dense<0.000000e+00> : vector<2x8x8xf32>
    %65 = tpu.matmul %64, %52, %cst_24 {dimension_numbers = #tpu.dot_dimension_numbers<[2], [1], [1], [2], [0, 0, 0, 1, 1, 2], [0], [0]>} : vector<2x8x8xbf16>, vector<2x8x8xbf16>, vector<2x8x8xf32> -> vector<2x8x8xf32>
    %66 = vector.shape_cast %65 : vector<2x8x8xf32> to vector<16x8xf32>
    %67 = arith.truncf %66 : vector<16x8xf32> to vector<16x8xbf16>
    %c0_25 = arith.constant 0 : index
    %c0_26 = arith.constant 0 : index
    %c0_27 = arith.constant 0 : index
    %68 = vector.load %arg7[%c0_25, %c0_26, %c0_27] : memref<1x128x128xbf16, #tpu.memory_space<vmem>>, vector<1x8x128xbf16>
    %69 = vector.shape_cast %68 : vector<1x8x128xbf16> to vector<8x128xbf16>
    %cst_28 = arith.constant dense<0.000000e+00> : vector<16x128xf32>
    %70 = tpu.matmul %67, %69, %cst_28 {dimension_numbers = #tpu.dot_dimension_numbers<[1], [0], [0], [1], [0, 0, 1, 1], [], []>} : vector<16x8xbf16>, vector<8x128xbf16>, vector<16x128xf32> -> vector<16x128xf32>
    %71 = arith.addf %44, %70 : vector<16x128xf32>
    %72 = vector.extract_strided_slice %43 {offsets = [0, 0, 8], sizes = [2, 8, 8], strides = [1, 1, 1]} : vector<2x8x384xf32> to vector<2x8x8xf32>
    %cst_29 = arith.constant 0.353553385 : f32
    %73 = vector.broadcast %cst_29 : f32 to vector<2x8x8xf32>
    %74 = arith.mulf %72, %73 : vector<2x8x8xf32>
    %75 = arith.truncf %74 : vector<2x8x8xf32> to vector<2x8x8xbf16>
    %76 = vector.extract_strided_slice %43 {offsets = [0, 0, 136], sizes = [2, 8, 8], strides = [1, 1, 1]} : vector<2x8x384xf32> to vector<2x8x8xf32>
    %77 = arith.truncf %76 : vector<2x8x8xf32> to vector<2x8x8xbf16>
    %78 = vector.extract_strided_slice %43 {offsets = [0, 0, 264], sizes = [2, 8, 8], strides = [1, 1, 1]} : vector<2x8x384xf32> to vector<2x8x8xf32>
    %79 = arith.truncf %78 : vector<2x8x8xf32> to vector<2x8x8xbf16>
    %cst_30 = arith.constant dense<0.000000e+00> : vector<2x8x8xf32>
    %80 = tpu.matmul %75, %77, %cst_30 {dimension_numbers = #tpu.dot_dimension_numbers<[2], [2], [1], [1], [0, 0, 0, 1, 1, 1], [0], [0]>} : vector<2x8x8xbf16>, vector<2x8x8xbf16>, vector<2x8x8xf32> -> vector<2x8x8xf32>
    %cst_31 = arith.constant dense<0xFF800000> : vector<2x8xf32>
    %81 = vector.multi_reduction <maximumf>, %80, %cst_31 [2] : vector<2x8x8xf32> to vector<2x8xf32>
    %82 = vector.shape_cast %81 : vector<2x8xf32> to vector<2x8x1xf32>
    %83 = vector.broadcast %82 : vector<2x8x1xf32> to vector<2x8x8xf32>
    %84 = arith.subf %80, %83 : vector<2x8x8xf32>
    %85 = math.exp %84 : vector<2x8x8xf32>
    %cst_32 = arith.constant dense<0.000000e+00> : vector<2x8xf32>
    %86 = vector.multi_reduction <add>, %85, %cst_32 [2] : vector<2x8x8xf32> to vector<2x8xf32>
    %87 = vector.shape_cast %86 : vector<2x8xf32> to vector<2x8x1xf32>
    %88 = tpu.reciprocal %87 {approx = true} : vector<2x8x1xf32> -> vector<2x8x1xf32>
    %89 = vector.broadcast %88 : vector<2x8x1xf32> to vector<2x8x8xf32>
    %90 = arith.mulf %85, %89 : vector<2x8x8xf32>
    %91 = arith.truncf %90 : vector<2x8x8xf32> to vector<2x8x8xbf16>
    %cst_33 = arith.constant dense<0.000000e+00> : vector<2x8x8xf32>
    %92 = tpu.matmul %91, %79, %cst_33 {dimension_numbers = #tpu.dot_dimension_numbers<[2], [1], [1], [2], [0, 0, 0, 1, 1, 2], [0], [0]>} : vector<2x8x8xbf16>, vector<2x8x8xbf16>, vector<2x8x8xf32> -> vector<2x8x8xf32>
    %93 = vector.shape_cast %92 : vector<2x8x8xf32> to vector<16x8xf32>
    %94 = arith.truncf %93 : vector<16x8xf32> to vector<16x8xbf16>
    %c0_34 = arith.constant 0 : index
    %c8 = arith.constant 8 : index
    %c0_35 = arith.constant 0 : index
    %95 = vector.load %arg7[%c0_34, %c8, %c0_35] : memref<1x128x128xbf16, #tpu.memory_space<vmem>>, vector<1x8x128xbf16>
    %96 = vector.shape_cast %95 : vector<1x8x128xbf16> to vector<8x128xbf16>
    %cst_36 = arith.constant dense<0.000000e+00> : vector<16x128xf32>
    %97 = tpu.matmul %94, %96, %cst_36 {dimension_numbers = #tpu.dot_dimension_numbers<[1], [0], [0], [1], [0, 0, 1, 1], [], []>} : vector<16x8xbf16>, vector<8x128xbf16>, vector<16x128xf32> -> vector<16x128xf32>
    %98 = arith.addf %71, %97 : vector<16x128xf32>
    %99 = vector.extract_strided_slice %43 {offsets = [0, 0, 16], sizes = [2, 8, 8], strides = [1, 1, 1]} : vector<2x8x384xf32> to vector<2x8x8xf32>
    %cst_37 = arith.constant 0.353553385 : f32
    %100 = vector.broadcast %cst_37 : f32 to vector<2x8x8xf32>
    %101 = arith.mulf %99, %100 : vector<2x8x8xf32>
    %102 = arith.truncf %101 : vector<2x8x8xf32> to vector<2x8x8xbf16>
    %103 = vector.extract_strided_slice %43 {offsets = [0, 0, 144], sizes = [2, 8, 8], strides = [1, 1, 1]} : vector<2x8x384xf32> to vector<2x8x8xf32>
    %104 = arith.truncf %103 : vector<2x8x8xf32> to vector<2x8x8xbf16>
    %105 = vector.extract_strided_slice %43 {offsets = [0, 0, 272], sizes = [2, 8, 8], strides = [1, 1, 1]} : vector<2x8x384xf32> to vector<2x8x8xf32>
    %106 = arith.truncf %105 : vector<2x8x8xf32> to vector<2x8x8xbf16>
    %cst_38 = arith.constant dense<0.000000e+00> : vector<2x8x8xf32>
    %107 = tpu.matmul %102, %104, %cst_38 {dimension_numbers = #tpu.dot_dimension_numbers<[2], [2], [1], [1], [0, 0, 0, 1, 1, 1], [0], [0]>} : vector<2x8x8xbf16>, vector<2x8x8xbf16>, vector<2x8x8xf32> -> vector<2x8x8xf32>
    %cst_39 = arith.constant dense<0xFF800000> : vector<2x8xf32>
    %108 = vector.multi_reduction <maximumf>, %107, %cst_39 [2] : vector<2x8x8xf32> to vector<2x8xf32>
    %109 = vector.shape_cast %108 : vector<2x8xf32> to vector<2x8x1xf32>
    %110 = vector.broadcast %109 : vector<2x8x1xf32> to vector<2x8x8xf32>
    %111 = arith.subf %107, %110 : vector<2x8x8xf32>
    %112 = math.exp %111 : vector<2x8x8xf32>
    %cst_40 = arith.constant dense<0.000000e+00> : vector<2x8xf32>
    %113 = vector.multi_reduction <add>, %112, %cst_40 [2] : vector<2x8x8xf32> to vector<2x8xf32>
    %114 = vector.shape_cast %113 : vector<2x8xf32> to vector<2x8x1xf32>
    %115 = tpu.reciprocal %114 {approx = true} : vector<2x8x1xf32> -> vector<2x8x1xf32>
    %116 = vector.broadcast %115 : vector<2x8x1xf32> to vector<2x8x8xf32>
    %117 = arith.mulf %112, %116 : vector<2x8x8xf32>
    %118 = arith.truncf %117 : vector<2x8x8xf32> to vector<2x8x8xbf16>
    %cst_41 = arith.constant dense<0.000000e+00> : vector<2x8x8xf32>
    %119 = tpu.matmul %118, %106, %cst_41 {dimension_numbers = #tpu.dot_dimension_numbers<[2], [1], [1], [2], [0, 0, 0, 1, 1, 2], [0], [0]>} : vector<2x8x8xbf16>, vector<2x8x8xbf16>, vector<2x8x8xf32> -> vector<2x8x8xf32>
    %120 = vector.shape_cast %119 : vector<2x8x8xf32> to vector<16x8xf32>
    %121 = arith.truncf %120 : vector<16x8xf32> to vector<16x8xbf16>
    %c0_42 = arith.constant 0 : index
    %c16 = arith.constant 16 : index
    %c0_43 = arith.constant 0 : index
    %122 = vector.load %arg7[%c0_42, %c16, %c0_43] : memref<1x128x128xbf16, #tpu.memory_space<vmem>>, vector<1x8x128xbf16>
    %123 = vector.shape_cast %122 : vector<1x8x128xbf16> to vector<8x128xbf16>
    %cst_44 = arith.constant dense<0.000000e+00> : vector<16x128xf32>
    %124 = tpu.matmul %121, %123, %cst_44 {dimension_numbers = #tpu.dot_dimension_numbers<[1], [0], [0], [1], [0, 0, 1, 1], [], []>} : vector<16x8xbf16>, vector<8x128xbf16>, vector<16x128xf32> -> vector<16x128xf32>
    %125 = arith.addf %98, %124 : vector<16x128xf32>
    %126 = vector.extract_strided_slice %43 {offsets = [0, 0, 24], sizes = [2, 8, 8], strides = [1, 1, 1]} : vector<2x8x384xf32> to vector<2x8x8xf32>
    %cst_45 = arith.constant 0.353553385 : f32
    %127 = vector.broadcast %cst_45 : f32 to vector<2x8x8xf32>
    %128 = arith.mulf %126, %127 : vector<2x8x8xf32>
    %129 = arith.truncf %128 : vector<2x8x8xf32> to vector<2x8x8xbf16>
    %130 = vector.extract_strided_slice %43 {offsets = [0, 0, 152], sizes = [2, 8, 8], strides = [1, 1, 1]} : vector<2x8x384xf32> to vector<2x8x8xf32>
    %131 = arith.truncf %130 : vector<2x8x8xf32> to vector<2x8x8xbf16>
    %132 = vector.extract_strided_slice %43 {offsets = [0, 0, 280], sizes = [2, 8, 8], strides = [1, 1, 1]} : vector<2x8x384xf32> to vector<2x8x8xf32>
    %133 = arith.truncf %132 : vector<2x8x8xf32> to vector<2x8x8xbf16>
    %cst_46 = arith.constant dense<0.000000e+00> : vector<2x8x8xf32>
    %134 = tpu.matmul %129, %131, %cst_46 {dimension_numbers = #tpu.dot_dimension_numbers<[2], [2], [1], [1], [0, 0, 0, 1, 1, 1], [0], [0]>} : vector<2x8x8xbf16>, vector<2x8x8xbf16>, vector<2x8x8xf32> -> vector<2x8x8xf32>
    %cst_47 = arith.constant dense<0xFF800000> : vector<2x8xf32>
    %135 = vector.multi_reduction <maximumf>, %134, %cst_47 [2] : vector<2x8x8xf32> to vector<2x8xf32>
    %136 = vector.shape_cast %135 : vector<2x8xf32> to vector<2x8x1xf32>
    %137 = vector.broadcast %136 : vector<2x8x1xf32> to vector<2x8x8xf32>
    %138 = arith.subf %134, %137 : vector<2x8x8xf32>
    %139 = math.exp %138 : vector<2x8x8xf32>
    %cst_48 = arith.constant dense<0.000000e+00> : vector<2x8xf32>
    %140 = vector.multi_reduction <add>, %139, %cst_48 [2] : vector<2x8x8xf32> to vector<2x8xf32>
    %141 = vector.shape_cast %140 : vector<2x8xf32> to vector<2x8x1xf32>
    %142 = tpu.reciprocal %141 {approx = true} : vector<2x8x1xf32> -> vector<2x8x1xf32>
    %143 = vector.broadcast %142 : vector<2x8x1xf32> to vector<2x8x8xf32>
    %144 = arith.mulf %139, %143 : vector<2x8x8xf32>
    %145 = arith.truncf %144 : vector<2x8x8xf32> to vector<2x8x8xbf16>
    %cst_49 = arith.constant dense<0.000000e+00> : vector<2x8x8xf32>
    %146 = tpu.matmul %145, %133, %cst_49 {dimension_numbers = #tpu.dot_dimension_numbers<[2], [1], [1], [2], [0, 0, 0, 1, 1, 2], [0], [0]>} : vector<2x8x8xbf16>, vector<2x8x8xbf16>, vector<2x8x8xf32> -> vector<2x8x8xf32>
    %147 = vector.shape_cast %146 : vector<2x8x8xf32> to vector<16x8xf32>
    %148 = arith.truncf %147 : vector<16x8xf32> to vector<16x8xbf16>
    %c0_50 = arith.constant 0 : index
    %c24 = arith.constant 24 : index
    %c0_51 = arith.constant 0 : index
    %149 = vector.load %arg7[%c0_50, %c24, %c0_51] : memref<1x128x128xbf16, #tpu.memory_space<vmem>>, vector<1x8x128xbf16>
    %150 = vector.shape_cast %149 : vector<1x8x128xbf16> to vector<8x128xbf16>
    %cst_52 = arith.constant dense<0.000000e+00> : vector<16x128xf32>
    %151 = tpu.matmul %148, %150, %cst_52 {dimension_numbers = #tpu.dot_dimension_numbers<[1], [0], [0], [1], [0, 0, 1, 1], [], []>} : vector<16x8xbf16>, vector<8x128xbf16>, vector<16x128xf32> -> vector<16x128xf32>
    %152 = arith.addf %125, %151 : vector<16x128xf32>
    %153 = arith.addf %8, %152 : vector<16x128xf32>
    %c0_53 = arith.constant 0 : index
    %c0_54 = arith.constant 0 : index
    %c0_55 = arith.constant 0 : index
    %154 = vector.load %arg8[%c0_53, %c0_54, %c0_55] : memref<1x1x128xf32, #tpu.memory_space<vmem>>, vector<1x1x128xf32>
    %155 = vector.shape_cast %154 : vector<1x1x128xf32> to vector<1x128xf32>
    %156 = vector.broadcast %155 : vector<1x128xf32> to vector<16x128xf32>
    %157 = arith.addf %153, %156 : vector<16x128xf32>
    %c0_56 = arith.constant 0 : index
    %c0_57 = arith.constant 0 : index
    %c0_58 = arith.constant 0 : index
    %158 = vector.load %arg9[%c0_56, %c0_57, %c0_58] : memref<1x1x128xf32, #tpu.memory_space<vmem>>, vector<1x1x128xf32>
    %159 = vector.shape_cast %158 : vector<1x1x128xf32> to vector<1x128xf32>
    %c0_59 = arith.constant 0 : index
    %c0_60 = arith.constant 0 : index
    %c0_61 = arith.constant 0 : index
    %160 = vector.load %arg10[%c0_59, %c0_60, %c0_61] : memref<1x1x128xf32, #tpu.memory_space<vmem>>, vector<1x1x128xf32>
    %161 = vector.shape_cast %160 : vector<1x1x128xf32> to vector<1x128xf32>
    %cst_62 = arith.constant dense<0.000000e+00> : vector<16xf32>
    %162 = vector.multi_reduction <add>, %157, %cst_62 [1] : vector<16x128xf32> to vector<16xf32>
    %163 = vector.shape_cast %162 : vector<16xf32> to vector<16x1xf32>
    %cst_63 = arith.constant 3.125000e-02 : f32
    %164 = vector.broadcast %cst_63 : f32 to vector<16x1xf32>
    %165 = arith.mulf %163, %164 : vector<16x1xf32>
    %166 = vector.broadcast %165 : vector<16x1xf32> to vector<16x128xf32>
    %167 = arith.subf %157, %166 : vector<16x128xf32>
    %168 = vector.broadcast %4 : vector<1x128xf32> to vector<16x128xf32>
    %169 = arith.mulf %167, %168 : vector<16x128xf32>
    %170 = arith.mulf %169, %169 : vector<16x128xf32>
    %cst_64 = arith.constant dense<0.000000e+00> : vector<16xf32>
    %171 = vector.multi_reduction <add>, %170, %cst_64 [1] : vector<16x128xf32> to vector<16xf32>
    %172 = vector.shape_cast %171 : vector<16xf32> to vector<16x1xf32>
    %cst_65 = arith.constant 3.125000e-02 : f32
    %173 = vector.broadcast %cst_65 : f32 to vector<16x1xf32>
    %174 = arith.mulf %172, %173 : vector<16x1xf32>
    %cst_66 = arith.constant 9.99999974E-6 : f32
    %175 = vector.broadcast %cst_66 : f32 to vector<16x1xf32>
    %176 = arith.addf %174, %175 : vector<16x1xf32>
    %177 = math.rsqrt %176 : vector<16x1xf32>
    %178 = vector.broadcast %177 : vector<16x1xf32> to vector<16x128xf32>
    %179 = arith.mulf %169, %178 : vector<16x128xf32>
    %180 = vector.broadcast %159 : vector<1x128xf32> to vector<16x128xf32>
    %181 = arith.mulf %179, %180 : vector<16x128xf32>
    %182 = vector.broadcast %161 : vector<1x128xf32> to vector<16x128xf32>
    %183 = arith.addf %181, %182 : vector<16x128xf32>
    %184 = arith.truncf %183 : vector<16x128xf32> to vector<16x128xbf16>
    %c0_67 = arith.constant 0 : index
    %c0_68 = arith.constant 0 : index
    %c0_69 = arith.constant 0 : index
    %185 = vector.load %arg11[%c0_67, %c0_68, %c0_69] : memref<1x128x128xbf16, #tpu.memory_space<vmem>>, vector<1x128x128xbf16>
    %186 = vector.shape_cast %185 : vector<1x128x128xbf16> to vector<128x128xbf16>
    %cst_70 = arith.constant dense<0.000000e+00> : vector<16x128xf32>
    %187 = tpu.matmul %184, %186, %cst_70 {dimension_numbers = #tpu.dot_dimension_numbers<[1], [0], [0], [1], [0, 0, 1, 1], [], []>} : vector<16x128xbf16>, vector<128x128xbf16>, vector<16x128xf32> -> vector<16x128xf32>
    %c0_71 = arith.constant 0 : index
    %c0_72 = arith.constant 0 : index
    %c0_73 = arith.constant 0 : index
    %188 = vector.load %arg12[%c0_71, %c0_72, %c0_73] : memref<1x1x128xf32, #tpu.memory_space<vmem>>, vector<1x1x128xf32>
    %189 = vector.shape_cast %188 : vector<1x1x128xf32> to vector<1x128xf32>
    %190 = vector.broadcast %189 : vector<1x128xf32> to vector<16x128xf32>
    %191 = arith.addf %187, %190 : vector<16x128xf32>
    %cst_74 = arith.constant 0.000000e+00 : f32
    %192 = vector.broadcast %cst_74 : f32 to vector<16x128xf32>
    %193 = arith.maximumf %191, %192 : vector<16x128xf32>
    %194 = arith.truncf %193 : vector<16x128xf32> to vector<16x128xbf16>
    %c0_75 = arith.constant 0 : index
    %c0_76 = arith.constant 0 : index
    %c0_77 = arith.constant 0 : index
    %195 = vector.load %arg13[%c0_75, %c0_76, %c0_77] : memref<1x128x128xbf16, #tpu.memory_space<vmem>>, vector<1x128x128xbf16>
    %196 = vector.shape_cast %195 : vector<1x128x128xbf16> to vector<128x128xbf16>
    %cst_78 = arith.constant dense<0.000000e+00> : vector<16x128xf32>
    %197 = tpu.matmul %194, %196, %cst_78 {dimension_numbers = #tpu.dot_dimension_numbers<[1], [0], [0], [1], [0, 0, 1, 1], [], []>} : vector<16x128xbf16>, vector<128x128xbf16>, vector<16x128xf32> -> vector<16x128xf32>
    %c0_79 = arith.constant 0 : index
    %c0_80 = arith.constant 0 : index
    %c0_81 = arith.constant 0 : index
    %198 = vector.load %arg14[%c0_79, %c0_80, %c0_81] : memref<1x1x128xf32, #tpu.memory_space<vmem>>, vector<1x1x128xf32>
    %199 = vector.shape_cast %198 : vector<1x1x128xf32> to vector<1x128xf32>
    %200 = vector.broadcast %199 : vector<1x128xf32> to vector<16x128xf32>
    %201 = arith.addf %197, %200 : vector<16x128xf32>
    %202 = arith.addf %157, %201 : vector<16x128xf32>
    %c0_82 = arith.constant 0 : index
    %c0_83 = arith.constant 0 : index
    %203 = vector.load %arg18[%c0_82, %c0_83] : memref<16x128xf32, #tpu.memory_space<vmem>>, vector<16x128xf32>
    tpu.vector_store %arg18[%c0_82, %c0_83], %202 {strides = array<i32>} : memref<16x128xf32, #tpu.memory_space<vmem>>, vector<16x128xf32>,
    %c1_i32 = arith.constant 1 : i32
    %204 = arith.cmpi eq, %arg1, %c1_i32 : i32
    %205 = arith.extui %204 : i1 to i32
    %c0_i32_84 = arith.constant 0 : i32
    %206 = arith.cmpi ne, %205, %c0_i32_84 : i32
    scf.if %206 {
      %c0_85 = arith.constant 0 : index
      %c0_86 = arith.constant 0 : index
      %207 = vector.load %arg15[%c0_85, %c0_86] : memref<1x128xf32, #tpu.memory_space<vmem>>, vector<1x128xf32>
      %c0_87 = arith.constant 0 : index
      %c0_88 = arith.constant 0 : index
      %208 = vector.load %arg16[%c0_87, %c0_88] : memref<1x128xf32, #tpu.memory_space<vmem>>, vector<1x128xf32>
      %cst_89 = arith.constant dense<0.000000e+00> : vector<16xf32>
      %209 = vector.multi_reduction <add>, %202, %cst_89 [1] : vector<16x128xf32> to vector<16xf32>
      %210 = vector.shape_cast %209 : vector<16xf32> to vector<16x1xf32>
      %cst_90 = arith.constant 3.125000e-02 : f32
      %211 = vector.broadcast %cst_90 : f32 to vector<16x1xf32>
      %212 = arith.mulf %210, %211 : vector<16x1xf32>
      %213 = vector.broadcast %212 : vector<16x1xf32> to vector<16x128xf32>
      %214 = arith.subf %202, %213 : vector<16x128xf32>
      %215 = vector.broadcast %4 : vector<1x128xf32> to vector<16x128xf32>
      %216 = arith.mulf %214, %215 : vector<16x128xf32>
      %217 = arith.mulf %216, %216 : vector<16x128xf32>
      %cst_91 = arith.constant dense<0.000000e+00> : vector<16xf32>
      %218 = vector.multi_reduction <add>, %217, %cst_91 [1] : vector<16x128xf32> to vector<16xf32>
      %219 = vector.shape_cast %218 : vector<16xf32> to vector<16x1xf32>
      %cst_92 = arith.constant 3.125000e-02 : f32
      %220 = vector.broadcast %cst_92 : f32 to vector<16x1xf32>
      %221 = arith.mulf %219, %220 : vector<16x1xf32>
      %cst_93 = arith.constant 9.99999974E-6 : f32
      %222 = vector.broadcast %cst_93 : f32 to vector<16x1xf32>
      %223 = arith.addf %221, %222 : vector<16x1xf32>
      %224 = math.rsqrt %223 : vector<16x1xf32>
      %225 = vector.broadcast %224 : vector<16x1xf32> to vector<16x128xf32>
      %226 = arith.mulf %216, %225 : vector<16x128xf32>
      %227 = vector.broadcast %207 : vector<1x128xf32> to vector<16x128xf32>
      %228 = arith.mulf %226, %227 : vector<16x128xf32>
      %229 = vector.broadcast %208 : vector<1x128xf32> to vector<16x128xf32>
      %230 = arith.addf %228, %229 : vector<16x128xf32>
      %231 = vector.shape_cast %230 : vector<16x128xf32> to vector<2x8x128xf32>
      %c0_94 = arith.constant 0 : index
      %c0_95 = arith.constant 0 : index
      %c0_96 = arith.constant 0 : index
      %232 = vector.load %arg17[%c0_94, %c0_95, %c0_96] : memref<2x8x128xf32, #tpu.memory_space<vmem>>, vector<2x8x128xf32>
      tpu.vector_store %arg17[%c0_94, %c0_95, %c0_96], %231 {strides = array<i32>} : memref<2x8x128xf32, #tpu.memory_space<vmem>>, vector<2x8x128xf32>,
    } else {
    }
    return
  }
  func.func @transform_0(%arg0: i32, %arg1: i32) -> (i32, i32, i32) {
    %c0_i32 = arith.constant 0 : i32
    %c0_i32_0 = arith.constant 0 : i32
    %c0_i32_1 = arith.constant 0 : i32
    return %arg0, %c0_i32, %c0_i32_0 : i32, i32, i32
  }
  func.func @transform_1(%arg0: i32, %arg1: i32) -> (i32, i32, i32) {
    %c0_i32 = arith.constant 0 : i32
    %c0_i32_0 = arith.constant 0 : i32
    %c0_i32_1 = arith.constant 0 : i32
    return %arg1, %c0_i32, %c0_i32_0 : i32, i32, i32
  }
  func.func @transform_2(%arg0: i32, %arg1: i32) -> (i32, i32, i32) {
    %c0_i32 = arith.constant 0 : i32
    %c0_i32_0 = arith.constant 0 : i32
    %c0_i32_1 = arith.constant 0 : i32
    return %arg1, %c0_i32, %c0_i32_0 : i32, i32, i32
  }
  func.func @transform_3(%arg0: i32, %arg1: i32) -> (i32, i32, i32) {
    %c0_i32 = arith.constant 0 : i32
    %c0_i32_0 = arith.constant 0 : i32
    %c0_i32_1 = arith.constant 0 : i32
    return %arg1, %c0_i32, %c0_i32_0 : i32, i32, i32
  }
  func.func @transform_4(%arg0: i32, %arg1: i32) -> (i32, i32, i32) {
    %c0_i32 = arith.constant 0 : i32
    %c0_i32_0 = arith.constant 0 : i32
    %c0_i32_1 = arith.constant 0 : i32
    return %arg1, %c0_i32, %c0_i32_0 : i32, i32, i32
  }
  func.func @transform_5(%arg0: i32, %arg1: i32) -> (i32, i32, i32) {
    %c0_i32 = arith.constant 0 : i32
    %c0_i32_0 = arith.constant 0 : i32
    %c0_i32_1 = arith.constant 0 : i32
    return %arg1, %c0_i32, %c0_i32_0 : i32, i32, i32
  }
  func.func @transform_6(%arg0: i32, %arg1: i32) -> (i32, i32, i32) {
    %c0_i32 = arith.constant 0 : i32
    %c0_i32_0 = arith.constant 0 : i32
    %c0_i32_1 = arith.constant 0 : i32
    return %arg1, %c0_i32, %c0_i32_0 : i32, i32, i32
  }
  func.func @transform_7(%arg0: i32, %arg1: i32) -> (i32, i32, i32) {
    %c0_i32 = arith.constant 0 : i32
    %c0_i32_0 = arith.constant 0 : i32
    %c0_i32_1 = arith.constant 0 : i32
    return %arg1, %c0_i32, %c0_i32_0 : i32, i32, i32
  }
  func.func @transform_8(%arg0: i32, %arg1: i32) -> (i32, i32, i32) {
    %c0_i32 = arith.constant 0 : i32
    %c0_i32_0 = arith.constant 0 : i32
    %c0_i32_1 = arith.constant 0 : i32
    return %arg1, %c0_i32, %c0_i32_0 : i32, i32, i32
  }
  func.func @transform_9(%arg0: i32, %arg1: i32) -> (i32, i32, i32) {
    %c0_i32 = arith.constant 0 : i32
    %c0_i32_0 = arith.constant 0 : i32
    %c0_i32_1 = arith.constant 0 : i32
    return %arg1, %c0_i32, %c0_i32_0 : i32, i32, i32
  }
  func.func @transform_10(%arg0: i32, %arg1: i32) -> (i32, i32, i32) {
    %c0_i32 = arith.constant 0 : i32
    %c0_i32_0 = arith.constant 0 : i32
    %c0_i32_1 = arith.constant 0 : i32
    return %arg1, %c0_i32, %c0_i32_0 : i32, i32, i32
  }
  func.func @transform_11(%arg0: i32, %arg1: i32) -> (i32, i32, i32) {
    %c0_i32 = arith.constant 0 : i32
    %c0_i32_0 = arith.constant 0 : i32
    %c0_i32_1 = arith.constant 0 : i32
    return %arg1, %c0_i32, %c0_i32_0 : i32, i32, i32
  }
  func.func @transform_12(%arg0: i32, %arg1: i32) -> (i32, i32, i32) {
    %c0_i32 = arith.constant 0 : i32
    %c0_i32_0 = arith.constant 0 : i32
    %c0_i32_1 = arith.constant 0 : i32
    return %arg1, %c0_i32, %c0_i32_0 : i32, i32, i32
  }
  func.func @transform_13(%arg0: i32, %arg1: i32) -> (i32, i32) {
    %c0_i32 = arith.constant 0 : i32
    %c0_i32_0 = arith.constant 0 : i32
    %c0_i32_1 = arith.constant 0 : i32
    return %c0_i32, %c0_i32_0 : i32, i32
  }
  func.func @transform_14(%arg0: i32, %arg1: i32) -> (i32, i32) {
    %c0_i32 = arith.constant 0 : i32
    %c0_i32_0 = arith.constant 0 : i32
    %c0_i32_1 = arith.constant 0 : i32
    return %c0_i32, %c0_i32_0 : i32, i32
  }
  func.func @transform_15(%arg0: i32, %arg1: i32) -> (i32, i32, i32) {
    %c0_i32 = arith.constant 0 : i32
    %c0_i32_0 = arith.constant 0 : i32
    %c0_i32_1 = arith.constant 0 : i32
    return %arg0, %c0_i32, %c0_i32_0 : i32, i32, i32
  }
}

</mosaic_0001>

<bundles_post_ra>
// kernel: transformer_encoder_forward.1
= control target key start
LH: loop header
LB: loop body
LE: loop exit
PB: predicated region body
PF: predicated region fallthrough
CT: control target
= control target key end

     0   :  { %s2457_s18 = smov 0   ;;  %s2459_s19 = smov 0   ;;  %s2819_s0 = inlined_call_operand.vmem [shape: f32[2,8,128], index: 0, kind: input, shape index: {}, may-alias: {0,15}]   ;;  %s2820_s1 = inlined_call_operand.vmem [shape: f32[2,1,128], index: 1, kind: input, shape index: {}]   ;;  %s2821_s2 = inlined_call_operand.vmem [shape: f32[2,1,128], index: 2, kind: input, shape index: {}]   ;;  %s2822_s3 = inlined_call_operand.vmem [shape: bf16[2,128,384], index: 3, kind: input, shape index: {}]   ;;  %s2823_s4 = inlined_call_operand.vmem [shape: f32[2,1,384], index: 4, kind: input, shape index: {}]   ;;  %s2824_s5 = inlined_call_operand.vmem [shape: bf16[2,128,128], index: 5, kind: input, shape index: {}]   ;;  %s2825_s6 = inlined_call_operand.vmem [shape: f32[2,1,128], index: 6, kind: input, shape index: {}]   ;;  %s2826_s7 = inlined_call_operand.vmem [shape: f32[2,1,128], index: 7, kind: input, shape index: {}]   ;;  %s2827_s8 = inlined_call_operand.vmem [shape: f32[2,1,128], index: 8, kind: input, shape index: {}]   ;;  %s2828_s9 = inlined_call_operand.vmem [shape: bf16[2,128,128], index: 9, kind: input, shape index: {}]   ;;  %s2829_s10 = inlined_call_operand.vmem [shape: f32[2,1,128], index: 10, kind: input, shape index: {}]   ;;  %s2830_s11 = inlined_call_operand.vmem [shape: bf16[2,128,128], index: 11, kind: input, shape index: {}]   ;;  %s2831_s12 = inlined_call_operand.vmem [shape: f32[2,1,128], index: 12, kind: input, shape index: {}]   ;;  %s2832_s13 = inlined_call_operand.vmem [shape: f32[1,128], index: 13, kind: input, shape index: {}]   ;;  %s2833_s14 = inlined_call_operand.vmem [shape: f32[1,128], index: 14, kind: input, shape index: {}]   ;;  %s2834_s15 = inlined_call_operand.vmem [shape: f32[2,8,128], index: 15, kind: output, shape index: {}, may-alias: {0,15}]  }
   0x1   :  { %2839 = sst [smem:[#allocation7_spill]] %s2821_s2  ;;  %s2461_s20 = smov 0  }
   0x2   :  { %2840 = sst [smem:[#allocation8_spill]] %s2824_s5 }
   0x3   :  { %2841 = sst [smem:[#allocation9_spill]] %s2832_s13 }
   0x4   :  { %2842 = sst [smem:[#allocation10_spill]] %s2833_s14 }
   0x5   :  { %2843 = sst [smem:[#allocation11_spill]] %s2834_s15 }
   0x6 LB: > { %2844 = sst [smem:[#allocation3_spill]] %s2367_s19  ;;  %s34_s21 = sadd.s32 1, %s2367_s19  ;;  %s2371_s20 = sphi %s2461_s20, %s25_s20   ;;  %s2367_s19 = sphi %s2459_s19, %s2861_s19   ;;  %s2363_s18 = sphi %s2457_s18, %s2860_s18  }
   0x7   : > { %2845 = sst [smem:[#allocation4_spill]] %s2371_s20  ;;  %p2028_p0 = scmp.ge.s32.totalorder %s2371_s20, 1 }
   0x8   : > { %p35_p1 = scmp.ge.s32.totalorder %s34_s21, 2  ;;  %p555_p2 = scmp.lt.s32.totalorder %s2371_s20, 3 }
   0xa   : > { %s2863_s21 = smov (%p35_p1, %s34_s21), 0  ;;  %p556_p3 = pnand %p2028_p0, %p555_p2 }
   0xb   : > { %2846 = sst [smem:[#allocation5_spill]] %s2863_s21 }
   0xc   : > { %559 = sbr.rel (%p556_p3) target bundleno = 3169 (0xc61), region = 80 }
  0x11   : > { %p654_p4 = scmp.lt.s32.totalorder %s2363_s18, 1  ;;  %v706_v0 = vlaneseq  ;;  %v2373_v2 = vmov 0.0   ;;  %s2848_s5 = sld [smem:[#allocation8_spill]] }
  0x12   : > { %p2037_p5 = scmp.ne.s32.totalorder %s2363_s18, 0 }
  0x13   : > { %s2479_s22 = scalar_select %p654_p4, %s2363_s18, 1  ;;  %v707_v1 = vand.u32 127, %v706_v0 }
  0x15   : > { %vm708_vm0 = vcmp.lt.s32.totalorder %v707_v1, 32  ;;  %s2266_s29 = smul.u32 192, %s2479_s22  ;;  %s2223_s30 = sshll.u32 %s2479_s22, 6 }
  0x16   : > { %v2491_v3 = vsel %vm708_vm0, 1.0, %v2373_v2  ;;  %s2267_s16 = smul.u32 3, %s2479_s22  ;;  %s2524_s24 = scalar_lea.vmem %s2828_s9, %s2223_s30 }
  0x17   : > { %s2497_s19 = scalar_lea.vmem %s2848_s5, %s2223_s30  ;;  %s2502_s25 = scalar_lea.vmem %s2822_s3, %s2266_s29 }
  0x18   : > { %2849 = sst [smem:[#allocation6_spill]] %s2497_s19  ;;  %s2511_s14 = scalar_lea.vmem %s2823_s4, %s2267_s16 }
  0x19   : > { %s682_s19 = scalar_lea.vmem %s2827_s8, %s2479_s22  ;;  %s690_s28 = scalar_lea.vmem %s2829_s10, %s2479_s22 }
  0x1a   : > { %s2533_s16 = scalar_lea.vmem %s2830_s11, %s2223_s30  ;;  %s698_s21 = scalar_lea.vmem %s2831_s12, %s2479_s22 }
  0x1b   : > { %714 = sbr.rel (%p2037_p5) target bundleno = 35 (0x23), region = 84 }
  0x20   : > { %v715_v4 = vld [vmem:[%s2819_s0] sm:$0xff]  ;;  %v716_v5 = vld [vmem:[%s2819_s0 + $0x8] sm:$0xff] }
  0x21   : > { %717 = vst [vmem:[#allocation2] sm:$0xff] %v715_v4 }
  0x22   : > { %718 = vst [vmem:[#allocation2 + $0x8] sm:$0xff] %v716_v5 }
  0x23 PF: > { %v2124_v18 = vld [vmem:[%s2502_s25 + $0xa8] sm:$0xf]  ;;  %v2248_v19 = vld [vmem:[%s2502_s25 + $0xb0] sm:$0xf0]  ;;  %v2247_v20 = vld [vmem:[%s2502_s25 + $0xac] sm:$0xf]  ;;  %s2850_s26 = scalar_lea.vmem %s2820_s1, %s2479_s22 }
  0x24   : > { %v2125_v21 = vor.u32 %v2248_v19, %v2124_v18  ;;  %v2126_v22 = vld [vmem:[%s2502_s25 + $0xb4] sm:$0xf0]  ;;  %v2132_v23 = vld [vmem:[%s2502_s25 + $0xb0] sm:$0xf]  ;;  %v2249_v24 = vld [vmem:[%s2502_s25 + $0xb8] sm:$0xf0] }
  0x25   : > { %v2129_v25 = vor.u32 %v2247_v20, %v2126_v22  ;;  %v2133_v26 = vor.u32 %v2249_v24, %v2132_v23  ;;  %v2112_v27 = vld [vmem:[%s2502_s25 + $0x90] sm:$0xf]  ;;  %v2245_v28 = vld [vmem:[%s2502_s25 + $0x98] sm:$0xf0]  ;;  %v2244_v29 = vld [vmem:[%s2502_s25 + $0x94] sm:$0xf] }
  0x26   : > { %944 = vmatpush.bf16.msra.mxu0 %v2125_v21  ;;  %v2113_v30 = vor.u32 %v2245_v28, %v2112_v27  ;;  %v2114_v31 = vld [vmem:[%s2502_s25 + $0x9c] sm:$0xf0]  ;;  %v2120_v32 = vld [vmem:[%s2502_s25 + $0x98] sm:$0xf]  ;;  %v2246_v33 = vld [vmem:[%s2502_s25 + $0xa0] sm:$0xf0] }
  0x27   : > { %958 = vmatpush.bf16.msra.mxu1 %v2129_v25  ;;  %972 = vmatpush.bf16.msra.mxu2 %v2133_v26  ;;  %v2117_v34 = vor.u32 %v2244_v29, %v2114_v31  ;;  %v2121_v35 = vor.u32 %v2246_v33, %v2120_v32  ;;  %v2100_v36 = vld [vmem:[%s2502_s25 + $0x78] sm:$0xf]  ;;  %v2242_v37 = vld [vmem:[%s2502_s25 + $0x80] sm:$0xf0]  ;;  %v2241_v38 = vld [vmem:[%s2502_s25 + $0x7c] sm:$0xf] }
  0x28   : > { %v2546_v6 = vld [vmem:[#allocation2] sm:$0xff]  ;;  %v2101_v39 = vor.u32 %v2242_v37, %v2100_v36  ;;  %v2102_v40 = vld [vmem:[%s2502_s25 + $0x84] sm:$0xf0]  ;;  %v2243_v42 = vld [vmem:[%s2502_s25 + $0x88] sm:$0xf0]  ;;  %s2851_s20 = sld [smem:[#allocation7_spill]] }
  0x29   : > { %723 = vadd.xlane.f32.xlu0 %v2546_v6  ;;  %v2549_v7 = vld [vmem:[#allocation2 + $0x8] sm:$0xff]  ;;  %v2108_v41 = vld [vmem:[%s2502_s25 + $0x80] sm:$0xf]  ;;  %v2105_v43 = vor.u32 %v2241_v38, %v2102_v40  ;;  %v2238_v47 = vld [vmem:[%s2502_s25 + $0x64] sm:$0xf]  ;;  %vm994_vm7 = vcmask 64512  }
  0x2a   : > { %945 = vmatpush.bf16.msra.mxu0 %v2113_v30  ;;  %v2109_v44 = vor.u32 %v2243_v42, %v2108_v41  ;;  %v2088_v45 = vld [vmem:[%s2502_s25 + $0x60] sm:$0xf]  ;;  %v2239_v46 = vld [vmem:[%s2502_s25 + $0x68] sm:$0xf0]  ;;  %v2090_v49 = vld [vmem:[%s2502_s25 + $0x6c] sm:$0xf0] }
  0x2b   : > { %959 = vmatpush.bf16.msra.mxu1 %v2117_v34  ;;  %973 = vmatpush.bf16.msra.mxu2 %v2121_v35  ;;  %v2089_v48 = vor.u32 %v2239_v46, %v2088_v45  ;;  %v2096_v50 = vld [vmem:[%s2502_s25 + $0x68] sm:$0xf]  ;;  %v2240_v51 = vld [vmem:[%s2502_s25 + $0x70] sm:$0xf0]  ;;  %v2093_v52 = vor.u32 %v2238_v47, %v2090_v49  ;;  %v2235_v56 = vld [vmem:[%s2502_s25 + $0x4c] sm:$0xf] }
  0x2c   : > { %v2097_v53 = vor.u32 %v2240_v51, %v2096_v50  ;;  %v2076_v54 = vld [vmem:[%s2502_s25 + $0x48] sm:$0xf]  ;;  %v2236_v55 = vld [vmem:[%s2502_s25 + $0x50] sm:$0xf0]  ;;  %v2078_v58 = vld [vmem:[%s2502_s25 + $0x54] sm:$0xf0] }
  0x2d   : > { %v2077_v57 = vor.u32 %v2236_v55, %v2076_v54  ;;  %v2084_v59 = vld [vmem:[%s2502_s25 + $0x50] sm:$0xf]  ;;  %v2237_v60 = vld [vmem:[%s2502_s25 + $0x58] sm:$0xf0]  ;;  %v2081_v61 = vor.u32 %v2235_v56, %v2078_v58  ;;  %v2232_v1 = vld [vmem:[%s2502_s25 + $0x34] sm:$0xf] }
  0x2e   : > { %946 = vmatpush.bf16.msra.mxu0 %v2101_v39  ;;  %v2085_v62 = vor.u32 %v2237_v60, %v2084_v59  ;;  %v2064_v63 = vld [vmem:[%s2502_s25 + $0x30] sm:$0xf]  ;;  %v2233_v0 = vld [vmem:[%s2502_s25 + $0x38] sm:$0xf0]  ;;  %v2066_v4 = vld [vmem:[%s2502_s25 + $0x3c] sm:$0xf0]  ;;  %s2852_s2 = scalar_lea.vmem %s2851_s20, %s2479_s22 }
  0x2f   : > { %960 = vmatpush.bf16.msra.mxu1 %v2105_v43  ;;  %974 = vmatpush.bf16.msra.mxu2 %v2109_v44  ;;  %v2065_v2 = vor.u32 %v2233_v0, %v2064_v63  ;;  %v2072_v5 = vld [vmem:[%s2502_s25 + $0x38] sm:$0xf]  ;;  %v2060_v18 = vld [vmem:[%s2502_s25 + $0x20] sm:$0xf]  ;;  %v2231_v19 = vld [vmem:[%s2502_s25 + $0x28] sm:$0xf0] }
  0x30   : > { %v2061_v21 = vor.u32 %v2231_v19, %v2060_v18  ;;  %v2040_v22 = vld [vmem:[%s2502_s25] sm:$0xf]  ;;  %v2227_v23 = vld [vmem:[%s2502_s25 + $0x8] sm:$0xf0]  ;;  %v2226_v24 = vld [vmem:[%s2502_s25 + $0x4] sm:$0xf] }
  0x31   : > { %725 = vadd.xlane.f32.xlu0 %v2549_v7  ;;  %v2041_v26 = vor.u32 %v2227_v23, %v2040_v22  ;;  %v2042_v27 = vld [vmem:[%s2502_s25 + $0xc] sm:$0xf0]  ;;  %v2048_v28 = vld [vmem:[%s2502_s25 + $0x8] sm:$0xf]  ;;  %v2228_v29 = vld [vmem:[%s2502_s25 + $0x10] sm:$0xf0] }
  0x32   : > { %947 = vmatpush.bf16.msra.mxu0 %v2089_v48  ;;  %v2045_v31 = vor.u32 %v2226_v24, %v2042_v27  ;;  %v2049_v32 = vor.u32 %v2228_v29, %v2048_v28  ;;  %v2296_v50 = vld [vmem:[%s2850_s26] ss:$0 sm:$0xff]  ;;  %vm1060_vm8 = vcmask 1043456   ;;  %s2375_s13 = smov 112   ;;  %s2853_s5 = sld [smem:[#allocation6_spill]] }
  0x33   : > { %961 = vmatpush.bf16.msra.mxu1 %v2093_v52  ;;  %975 = vmatpush.bf16.msra.mxu2 %v2097_v53  ;;  %v2297_v55 = vld [vmem:[%s2852_s2] ss:$0 sm:$0xff]  ;;  %s2376_s17 = smov 104   ;;  %s2855_s26 = scalar_lea.vmem %s2826_s7, %s2479_s22 }
  0x34   : > { %v808_v59 = vld [vmem:[%s2511_s14] sm:$0x7]  ;;  %s2374_s14 = smov 120   ;;  %p2218_p6 = scmp.ne.s32.totalorder %s2363_s18, 1 }
  0x35   : > { %v810_v60 = vperm.slane %v808_v59, 0  ;;  %s2858_s23 = sld [smem:[#allocation11_spill]] (!%p2218_p6) }
  0x36   : > { %948 = vmatpush.bf16.msra.mxu0 %v2077_v57 }
  0x37   : > { %962 = vmatpush.bf16.msra.mxu1 %v2081_v61  ;;  %976 = vmatpush.bf16.msra.mxu2 %v2085_v62  ;;  %v811_v61 = vperm.slane %v808_v59, 1 }
  0x3a   : > { %949 = vmatpush.bf16.msra.mxu0 %v2065_v2 }
  0x9c   : > { %v724_v8 = vpop.xlane.xlu0 %723 }
  0x9d   : > { %v727_v9 = vmul.f32 0.03125, %v724_v8  ;;  %v2234_v8 = vld [vmem:[%s2502_s25 + $0x40] sm:$0xf0] }
  0x9f   : > { %v729_v10 = vsub.f32 %v2546_v6, %v727_v9  ;;  %v2069_v9 = vor.u32 %v2232_v1, %v2066_v4  ;;  %v812_v4 = vperm.slane %v808_v59, 2 }
  0xa1   : > { %v2554_v11 = vmul.f32 %v2491_v3, %v729_v10  ;;  %v2073_v10 = vor.u32 %v2234_v8, %v2072_v5  ;;  %963 = vmatpush.bf16.msra.mxu1 %v2069_v9 }
  0xa3   : > { %v733_v12 = vmul.f32 %v2554_v11, %v2554_v11  ;;  %977 = vmatpush.bf16.msra.mxu2 %v2073_v10 }
  0xa4   : > { %v726_v13 = vpop.xlane.xlu0 %725 }
  0xa5   : > { %v728_v14 = vmul.f32 0.03125, %v726_v13  ;;  %735 = vadd.xlane.f32.xlu1 %v733_v12  ;;  %v2052_v12 = vld [vmem:[%s2502_s25 + $0x18] sm:$0xf]  ;;  %v2230_v13 = vld [vmem:[%s2502_s25 + $0x20] sm:$0xf0] }
  0xa7   : > { %v730_v15 = vsub.f32 %v2549_v7, %v728_v14  ;;  %v2229_v14 = vld [vmem:[%s2502_s25 + $0x1c] sm:$0xf]  ;;  %978 = vmatpush.bf16.msra.mxu2 %v2061_v21 }
  0xa9   : > { %v2560_v16 = vmul.f32 %v2491_v3, %v730_v15  ;;  %v2053_v15 = vor.u32 %v2230_v13, %v2052_v12 }
  0xab   : > { %v734_v17 = vmul.f32 %v2560_v16, %v2560_v16  ;;  %950 = vmatpush.bf16.msra.mxu0 %v2053_v15  ;;  %979 = vmatpush.bf16.msra.mxu2 %v2049_v32 }
  0xad   : > { %737 = vadd.xlane.f32.xlu1 %v734_v17  ;;  %v2054_v17 = vld [vmem:[%s2502_s25 + $0x24] sm:$0xf0]  ;;  %s2854_s25 = scalar_lea.vmem %s2825_s6, %s2479_s22 }
  0xae   : > { %v2057_v20 = vor.u32 %v2229_v14, %v2054_v17 }
  0xaf   : > { %951 = vmatpush.bf16.msra.mxu0 %v2041_v26 }
  0xb0   : > { %964 = vmatpush.bf16.msra.mxu1 %v2057_v20 }
  0xb4   : > { %965 = vmatpush.bf16.msra.mxu1 %v2045_v31 }
 0x118   : > { %v736_v25 = vpop.xlane.xlu1 %735 }
 0x119   : > { %v739_v30 = vmul.f32 0.03125, %v736_v25 }
 0x11b   : > { %v741_v33 = vadd.f32 1e-05, %v739_v30 }
 0x11d   : > { %2303 = vrsqrt.f32 %v741_v33  ;;  %vm749_vm2 = vweird.f32 %v741_v33 }
 0x120   : > { %v738_v34 = vpop.xlane.xlu1 %737 }
 0x121   : > { %v740_v35 = vmul.f32 0.03125, %v738_v34 }
 0x123   : > { %v2304_v36 = vpop.eup %2303  ;;  %v742_v37 = vadd.f32 1e-05, %v740_v35 }
 0x124   : > { %v744_v38 = vmul.f32 %v2304_v36, %v741_v33  ;;  %vm750_vm1 = vweird.f32 %v2304_v36 }
 0x125   : > { %2305 = vrsqrt.f32 %v742_v37  ;;  %vm751_vm3 = vmor %vm749_vm2, %vm750_vm1  ;;  %vm759_vm5 = vweird.f32 %v742_v37 }
 0x126   : > { %v745_v39 = vmul.f32 %v2304_v36, %v744_v38 }
 0x128   : > { %v746_v40 = vmul.f32 0.5, %v745_v39 }
 0x12a   : > { %v747_v41 = vsub.f32 1.5, %v746_v40 }
 0x12b   : > { %v2306_v42 = vpop.eup %2305 }
 0x12c   : > { %v748_v43 = vmul.f32 %v2304_v36, %v747_v41  ;;  %v754_v44 = vmul.f32 %v2306_v42, %v742_v37  ;;  %vm760_vm4 = vweird.f32 %v2306_v42 }
 0x12d   : > { %vm761_vm6 = vmor %vm759_vm5, %vm760_vm4 }
 0x12e   : > { %v755_v45 = vmul.f32 %v2306_v42, %v754_v44  ;;  %v752_v46 = vsel %vm751_vm3, %v2304_v36, %v748_v43 }
 0x12f   : > { %v763_v49 = vmul.f32 %v752_v46, %v2554_v11 }
 0x130   : > { %v756_v47 = vmul.f32 0.5, %v755_v45 }
 0x131   : > { %v768_v54 = vmul.f32 %v2296_v50, %v763_v49 }
 0x132   : > { %v757_v48 = vsub.f32 1.5, %v756_v47 }
 0x133   : > { %v773_v11 = vadd.f32 %v2297_v55, %v768_v54 }
 0x134   : > { %v758_v51 = vmul.f32 %v2306_v42, %v757_v48 }
 0x136   : > { %v762_v52 = vsel %vm761_vm6, %v2306_v42, %v758_v51 }
 0x137   : > { %v764_v53 = vmul.f32 %v762_v52, %v2560_v16  ;;  %v1229_v52 = vld [vmem:[%s2853_s5 + $0x4] sm:$0xf] }
 0x138   : > { %v1234_v54 = vsel %vm1060_vm8, %v1229_v52, 0 }
 0x139   : > { %v769_v56 = vmul.f32 %v2296_v50, %v764_v53  ;;  %1243 = vmatpush.bf16.msrb.mxu1 %v1234_v54  ;;  %v1097_v54 = vld [vmem:[%s2853_s5] sm:$0xf] }
 0x13b   : > { %v774_v57 = vadd.f32 %v2297_v55, %v769_v56 }
 0x13d   : > { %v775_v58 = vpack.c.bf16 %v774_v57, %v773_v11 }
 0x13f   : > { %952 = vmatmul.bf16.vlgmr.msra.gmra.mxu0 %v775_v58  ;;  %966 = vmatmul.bf16.vlgmr.msra.gmra.mxu1 %v775_v58 }
 0x140   : > { %980 = vmatmul.bf16.vlgmr.msra.gmra.mxu2 %v775_v58 }
 0x1bc   : > { %v953_v62 = vpop.f32.mrf.mxu0  ;;  %v967_v63 = vpop.f32.mrf.mxu1 }
 0x1bd   : > { %v954_v0 = vadd.f32 %v953_v62, %v810_v60  ;;  %v968_v16 = vadd.f32 %v967_v63, %v811_v61 }
 0x1bf   : > { %v986_v1 = vmul.f32 0.35355338, %v954_v0  ;;  %v990_v2 = vpack.c.bf16 %v968_v16, %v968_v16 }
 0x1c1   : > { %v988_v5 = vpack.c.bf16 %v986_v1, %v986_v1  ;;  %v1104_v8 = vunpack.c.l.b16 %v990_v2  ;;  %v999_v9 = vsel %vm994_vm7, %v990_v2, 0 }
 0x1c2   : > { %1008 = vmatpush.bf16.xpose.msra.mxu3 %v999_v9 }
 0x1c3   : > { %v1099_v10 = vunpack.c.l.b16 %v988_v5  ;;  %v1105_v12 = vpack.c.b16 %v1104_v8, %v1104_v8  ;;  %v981_v13 = vpop.f32.mrf.mxu2 }
 0x1c4   : > { %v982_v14 = vadd.f32 %v981_v13, %v812_v4  ;;  %v955_v15 = vpop.f32.mrf.mxu0  ;;  %v969_v17 = vpop.f32.mrf.mxu1 }
 0x1c5   : > { %v956_v18 = vadd.f32 %v955_v15, %v810_v60  ;;  %v970_v19 = vadd.f32 %v969_v17, %v811_v61  ;;  %1106 = vrot.lane.b32.xlu0 %v1105_v12, %s2374_s14  ;;  %v1100_v20 = vpack.c.b16 %v1099_v10, %v1099_v10 }
 0x1c6   : > { %v992_v21 = vpack.c.bf16 %v982_v14, %v982_v14 }
 0x1c7   : > { %v987_v22 = vmul.f32 0.35355338, %v956_v18  ;;  %v991_v23 = vpack.c.bf16 %v970_v19, %v970_v19  ;;  %1101 = vrot.lane.b32.xlu1 %v1100_v20, %s2374_s14 }
 0x1c8   : > { %v1062_v26 = vsel %vm1060_vm8, %v992_v21, 0  ;;  %v1181_v33 = vunpack.c.l.b16 %v992_v21 }
 0x1c9   : > { %v989_v24 = vpack.c.bf16 %v987_v22, %v987_v22  ;;  %2134 = vmatmul.msk.bf16.vlgmr.msra.gmra.mxu3 %vm994_vm7, %v988_v5  ;;  %v1018_v25 = vsel %vm994_vm7, %v991_v23, 0  ;;  %v1133_v43 = vunpack.c.l.b16 %v991_v23 }
 0x1ca   : > { %1027 = vmatpush.bf16.xpose.msrb.mxu3 %v1018_v25  ;;  %v2639_v34 = vpack.c.b16 %v1181_v33, %v1181_v33 }
 0x1cb   : > { %v1128_v27 = vunpack.c.l.b16 %v989_v24  ;;  %v983_v28 = vpop.f32.mrf.mxu2  ;;  %v2657_v44 = vpack.c.b16 %v1133_v43, %v1133_v43 }
 0x1cc   : > { %v984_v29 = vadd.f32 %v983_v28, %v812_v4 }
 0x1cd   : > { %v2631_v30 = vpack.c.b16 %v1128_v27, %v1128_v27 }
 0x1ce   : > { %v2633_v31 = vpack.c.bf16 %v984_v29, %v984_v29 }
 0x1cf   : > { %1130 = vrot.lane.b32.xlu0 %v2631_v30, %s2374_s14 }
 0x1d0   : > { %v1081_v32 = vsel %vm1060_vm8, %v2633_v31, 0 }
 0x1d1   : > { %1090 = vmatpush.bf16.msrb.mxu0 %v1081_v32  ;;  %v1205_v32 = vunpack.c.l.b16 %v2633_v31 }
 0x1d2   : > { %1071 = vmatpush.bf16.msra.mxu3 %v1062_v26 }
 0x1d3   : > { %v2687_v33 = vpack.c.b16 %v1205_v32, %v1205_v32 }
 0x1d7   : > { %1183 = vrot.lane.b32.xlu0 %v2639_v34, %s2374_s14 }
 0x1d9   : > { %2135 = vmatmul.msk.bf16.vlgmr.msrb.gmra.mxu3 %vm994_vm7, %v989_v24 }
 0x1df   : > { %1272 = vrot.lane.b32.xlu0 %v1105_v12, %s2375_s13 }
 0x1e7   : > { %1270 = vrot.lane.b32.xlu0 %v1100_v20, %s2375_s13 }
 0x237   : > { %v1107_v35 = vpop.permute.xlu0 %1106 }
 0x238   : > { %v1112_v36 = vsel %vm994_vm7, %v1107_v35, 0 }
 0x239   : > { %1121 = vmatpush.bf16.xpose.msrb.mxu3 %v1112_v36  ;;  %v1102_v1 = vpop.permute.xlu1 %1101 }
 0x241   : > { %v1131_v45 = vpop.permute.xlu0 %1130 }
 0x249   : > { %v1184_v46 = vpop.permute.xlu0 %1183 }
 0x24a   : > { %v1189_v16 = vsel %vm1060_vm8, %v1184_v46, 0 }
 0x24c   : > { %v1010_v37 = vpop.f32.mrf.mxu3 }
 0x24d   : > { %v1033_v38 = vsel %vm994_vm7, %v1010_v37, -inf }
 0x24e   : > { %1034 = vmax.xlane.f32.xlu2 %v1033_v38 }
 0x251   : > { %v1273_v50 = vpop.permute.xlu0 %1272 }
 0x252   : > { %v1278_v2 = vsel %vm994_vm7, %v1273_v50, 0 }
 0x254   : > { %v1012_v39 = vpop.f32.mrf.mxu3 }
 0x259   : > { %v2665_v55 = vpop.permute.xlu0 %1270 }
 0x25c   : > { %v2648_v40 = vpop.f32.mrf.mxu3 }
 0x25d   : > { %v1036_v41 = vsel %vm994_vm7, %v2648_v40, -inf }
 0x25e   : > { %1037 = vmax.xlane.f32.xlu0 %v1036_v41 }
 0x264   : > { %v1031_v42 = vpop.f32.mrf.mxu3 }
 0x272   : > { %1293 = vrot.lane.b32.xlu0 %v2631_v30, %s2375_s13 }
 0x27a   : > { %1340 = vrot.lane.b32.xlu0 %v2639_v34, %s2375_s13 }
 0x282   : > { %1408 = vrot.lane.b32.xlu0 %v1105_v12, %s2376_s17 }
 0x28a   : > { %1431 = vrot.lane.b32.xlu0 %v2657_v44, %s2376_s17 }
 0x292   : > { %1406 = vrot.lane.b32.xlu0 %v1100_v20, %s2376_s17 }
 0x2c1   : > { %v1035_v47 = vpop.xlane.xlu2 %1034 }
 0x2c2   : > { %v1039_v48 = vsub.f32 %v1010_v37, %v1035_v47 }
 0x2c4   : > { %v1041_v49 = vmul.f32 1.442695, %v1039_v48 }
 0x2c6   : > { %2307 = vpow2.f32 %v1041_v49 }
 0x2cc   : > { %v2308_v51 = vpop.eup %2307 }
 0x2cd   : > { %v1045_v53 = vsel %vm994_vm7, %v2308_v51, 0.0 }
 0x2ce   : > { %1046 = vadd.xlane.f32.xlu2 %v1045_v53 }
 0x2d1   : > { %v1038_v56 = vpop.xlane.xlu0 %1037 }
 0x2d2   : > { %v1040_v18 = vsub.f32 %v2648_v40, %v1038_v56 }
 0x2d4   : > { %v1043_v20 = vmul.f32 1.442695, %v1040_v18 }
 0x2e4   : > { %v2667_v11 = vpop.permute.xlu0 %1293 }
 0x2e6   : > { %1135 = vrot.lane.b32.xlu2 %v2657_v44, %s2374_s14 }
 0x2ec   : > { %v1341_v57 = vpop.permute.xlu0 %1340 }
 0x2ed   : > { %v1346_v58 = vsel %vm1060_vm8, %v1341_v57, 0 }
 0x2ee   : > { %1355 = vmatpush.bf16.msra.mxu1 %v1346_v58 }
 0x2f4   : > { %v1409_v48 = vpop.permute.xlu0 %1408 }
 0x2fc   : > { %v1432_v52 = vpop.permute.xlu0 %1431 }
 0x304   : > { %v1407_v53 = vpop.permute.xlu0 %1406 }
 0x341   : > { %v1047_v59 = vpop.xlane.xlu2 %1046 }
 0x342   : > { %2309 = vrcp.f32 %v1047_v59 }
 0x348   : > { %v2310_v60 = vpop.eup %2309 }
 0x349   : > { %v1053_v61 = vmul.f32 %v2310_v60, %v2308_v51  ;;  %v1136_v62 = vpop.permute.xlu2 %1135  ;;  %v1414_v51 = vsel %vm994_vm7, %v1409_v48, 0 }
 0x34a   : > { %v1141_v63 = vsel %vm994_vm7, %v1136_v62, 0 }
 0x34b   : > { %v1055_v0 = vpack.c.bf16 %v1053_v61, %v1053_v61  ;;  %1150 = vmatpush.bf16.xpose.msrb.mxu2 %v1141_v63 }
 0x34d   : > { %2136 = vmatmul.msk.bf16.vlgmr.msra.gmra.mxu3 %vm994_vm7, %v1055_v0  ;;  %v1437_v0 = vsel %vm994_vm7, %v1432_v52, 0 }
 0x34e   : > { %1198 = vmatpush.bf16.msra.mxu3 %v1189_v16 }
 0x352   : > { %2139 = vmatmul.msk.bf16.vlgmr.msrb.gmra.mxu2 %vm994_vm7, %v1131_v45 }
 0x35d   : > { %2138 = vmatmul.msk.bf16.vlgmr.msrb.gmra.mxu3 %vm994_vm7, %v1102_v1 }
 0x35e   : > { %1287 = vmatpush.bf16.xpose.msrb.mxu3 %v1278_v2 }
 0x3d0   : > { %v2678_v4 = vpop.f32.mrf.mxu3 }
 0x3d5   : > { %v1152_v5 = vpop.f32.mrf.mxu2 }
 0x3d6   : > { %v1159_v14 = vsel %vm994_vm7, %v1152_v5, -inf }
 0x3d8   : > { %v1075_v8 = vpop.f32.mrf.mxu3 }
 0x3dd   : > { %v1154_v9 = vpop.f32.mrf.mxu2 }
 0x3e0   : > { %v1123_v10 = vpop.f32.mrf.mxu3 }
 0x3e1   : > { %v1156_v12 = vsel %vm994_vm7, %v1123_v10, -inf }
 0x3e2   : > { %1157 = vmax.xlane.f32.xlu2 %v1156_v12 }
 0x3e8   : > { %v1125_v13 = vpop.f32.mrf.mxu3 }
 0x3ea   : > { %1160 = vmax.xlane.f32.xlu2 %v1159_v14 }
 0x455   : > { %v1158_v15 = vpop.xlane.xlu2 %1157 }
 0x456   : > { %v1162_v17 = vsub.f32 %v1123_v10, %v1158_v15 }
 0x458   : > { %v1164_v19 = vmul.f32 1.442695, %v1162_v17 }
 0x45a   : > { %2311 = vpow2.f32 %v1164_v19 }
 0x45b   : > { %2313 = vpow2.f32 %v1043_v20 }
 0x45d   : > { %v1161_v21 = vpop.xlane.xlu2 %1160 }
 0x45e   : > { %v1163_v22 = vsub.f32 %v1152_v5, %v1161_v21 }
 0x460   : > { %v2312_v23 = vpop.eup %2311  ;;  %v1166_v24 = vmul.f32 1.442695, %v1163_v22 }
 0x461   : > { %v1168_v25 = vsel %vm994_vm7, %v2312_v23, 0.0  ;;  %v2314_v26 = vpop.eup %2313 }
 0x462   : > { %2315 = vpow2.f32 %v1166_v24  ;;  %1169 = vadd.xlane.f32.xlu1 %v1168_v25  ;;  %v1048_v28 = vsel %vm994_vm7, %v2314_v26, 0.0 }
 0x468   : > { %v2316_v27 = vpop.eup %2315 }
 0x469   : > { %v1171_v29 = vsel %vm994_vm7, %v2316_v27, 0.0 }
 0x46a   : > { %1049 = vadd.xlane.f32.xlu1 %v1048_v28  ;;  %1172 = vadd.xlane.f32.xlu2 %v1171_v29 }
 0x482   : > { %1295 = vrot.lane.b32.xlu2 %v2657_v44, %s2375_s13 }
 0x483   : > { %1207 = vrot.lane.b32.xlu1 %v2687_v33, %s2374_s14 }
 0x4d5   : > { %v1170_v35 = vpop.xlane.xlu1 %1169 }
 0x4d6   : > { %2317 = vrcp.f32 %v1170_v35 }
 0x4dc   : > { %v2318_v36 = vpop.eup %2317 }
 0x4dd   : > { %v1176_v37 = vmul.f32 %v2318_v36, %v2312_v23  ;;  %v1050_v38 = vpop.xlane.xlu1 %1049  ;;  %v1173_v42 = vpop.xlane.xlu2 %1172 }
 0x4de   : > { %2319 = vrcp.f32 %v1050_v38 }
 0x4df   : > { %v1178_v39 = vpack.c.bf16 %v1176_v37, %v1176_v37  ;;  %2321 = vrcp.f32 %v1173_v42 }
 0x4e1   : > { %2140 = vmatmul.msk.bf16.vlgmr.msra.gmra.mxu3 %vm994_vm7, %v1178_v39 }
 0x4e4   : > { %v2320_v40 = vpop.eup %2319 }
 0x4e5   : > { %v1054_v41 = vmul.f32 %v2320_v40, %v2314_v26  ;;  %v2322_v43 = vpop.eup %2321  ;;  %v1296_v45 = vpop.permute.xlu2 %1295  ;;  %v1383_v26 = vld [vmem:[%s2853_s5 + $0x8] sm:$0xf] }
 0x4e6   : > { %v1177_v44 = vmul.f32 %v2322_v43, %v2316_v27  ;;  %v1301_v49 = vsel %vm994_vm7, %v1296_v45, 0  ;;  %v1388_v27 = vsel %vm1060_vm8, %v1383_v26, 0 }
 0x4e7   : > { %v1056_v31 = vpack.c.bf16 %v1054_v41, %v1054_v41  ;;  %1397 = vmatpush.bf16.msra.mxu3 %v1388_v27 }
 0x4e8   : > { %v1179_v50 = vpack.c.bf16 %v1177_v44, %v1177_v44 }
 0x4e9   : > { %2137 = vmatmul.msk.bf16.vlgmr.msrb.gmra.mxu0 %vm994_vm7, %v1056_v31 }
 0x4f1   : > { %2144 = vmatmul.msk.bf16.vlgmr.msrb.gmra.mxu3 %vm994_vm7, %v2665_v55  ;;  %v1254_v55 = vsel %vm1060_vm8, %v1097_v54, 0 }
 0x4f2   : > { %1263 = vmatpush.bf16.msra.mxu2 %v1254_v55 }
 0x4f5   : > { %v1208_v46 = vpop.permute.xlu1 %1207 }
 0x4f6   : > { %v1213_v47 = vsel %vm1060_vm8, %v1208_v46, 0 }
 0x4f7   : > { %1222 = vmatpush.bf16.msra.mxu0 %v1213_v47 }
 0x4fa   : > { %2141 = vmatmul.msk.bf16.vlgmr.msra.gmra.mxu0 %vm994_vm7, %v1179_v50 }
 0x4fb   : > { %1310 = vmatpush.bf16.xpose.msrb.mxu0 %v1301_v49 }
 0x503   : > { %1423 = vmatpush.bf16.xpose.msra.mxu0 %v1414_v51 }
 0x50a   : > { %2145 = vmatmul.msk.bf16.vlgmr.msrb.gmra.mxu0 %vm994_vm7, %v2667_v11 }
 0x51a   : > { %2149 = vmatmul.msk.bf16.vlgmr.msra.gmra.mxu0 %vm994_vm7, %v1407_v53 }
 0x564   : > { %v1200_v56 = vpop.f32.mrf.mxu3 }
 0x566   : > { %v1092_v57 = vpop.f32.mrf.mxu0 }
 0x567   : > { %v1096_v58 = vpack.c.bf16 %v1092_v57, %v2678_v4 }
 0x569   : > { %2143 = vmatmul.msk.bf16.vlgmr.msra.gmra.mxu2 %vm994_vm7, %v1096_v58 }
 0x56c   : > { %v1202_v59 = vpop.f32.mrf.mxu3 }
 0x56e   : > { %v1094_v60 = vpop.f32.mrf.mxu0 }
 0x574   : > { %v1289_v61 = vpop.f32.mrf.mxu3 }
 0x575   : > { %v1316_v62 = vsel %vm994_vm7, %v1289_v61, -inf }
 0x576   : > { %1317 = vmax.xlane.f32.xlu1 %v1316_v62 }
 0x577   : > { %v1224_v11 = vpop.f32.mrf.mxu0 }
 0x578   : > { %v1228_v63 = vpack.c.bf16 %v1224_v11, %v1200_v56 }
 0x57a   : > { %2142 = vmatmul.msk.bf16.vlgmr.msrb.gmra.mxu1 %vm994_vm7, %v1228_v63 }
 0x57b   : > { %1446 = vmatpush.bf16.xpose.msrb.mxu1 %v1437_v0 }
 0x57c   : > { %v1291_v16 = vpop.f32.mrf.mxu3 }
 0x57f   : > { %v1226_v1 = vpop.f32.mrf.mxu0 }
 0x587   : > { %v1312_v2 = vpop.f32.mrf.mxu0 }
 0x588   : > { %v1319_v4 = vsel %vm994_vm7, %v1312_v2, -inf }
 0x589   : > { %1320 = vmax.xlane.f32.xlu0 %v1319_v4 }
 0x58f   : > { %v1314_v5 = vpop.f32.mrf.mxu0  ;;  %1429 = vrot.lane.b32.xlu1 %v2631_v30, %s2376_s17 }
 0x597   : > { %v1425_v8 = vpop.f32.mrf.mxu0 }
 0x598   : > { %v1452_v10 = vsel %vm994_vm7, %v1425_v8, -inf }
 0x59f   : > { %v1427_v9 = vpop.f32.mrf.mxu0 }
 0x5b9   : > { %1453 = vmax.xlane.f32.xlu1 %v1452_v10 }
 0x5d2   : > { %1497 = vrot.lane.b32.xlu1 %v2687_v33, %s2376_s17 }
 0x5e9   : > { %v1318_v12 = vpop.xlane.xlu1 %1317 }
 0x5ea   : > { %v1322_v13 = vsub.f32 %v1289_v61, %v1318_v12 }
 0x5ec   : > { %v1324_v14 = vmul.f32 1.442695, %v1322_v13  ;;  %v1265_v18 = vpop.f32.mrf.mxu2 }
 0x5ee   : > { %2323 = vpow2.f32 %v1324_v14 }
 0x5f4   : > { %v2324_v15 = vpop.eup %2323  ;;  %v1267_v52 = vpop.f32.mrf.mxu2 }
 0x5f5   : > { %v1328_v17 = vsel %vm994_vm7, %v2324_v15, 0.0 }
 0x5f6   : > { %1329 = vadd.xlane.f32.xlu2 %v1328_v17 }
 0x5f7   : > { %v1245_v19 = vpop.f32.mrf.mxu1 }
 0x5f8   : > { %v1266_v30 = vadd.f32 %v1265_v18, %v1245_v19 }
 0x5fc   : > { %v1321_v20 = vpop.xlane.xlu0 %1320 }
 0x5fd   : > { %v1323_v21 = vsub.f32 %v1312_v2, %v1321_v20 }
 0x5ff   : > { %v1326_v22 = vmul.f32 1.442695, %v1323_v21  ;;  %v1247_v47 = vpop.f32.mrf.mxu1  ;;  %v2298_v21 = vld [vmem:[%s2854_s25] ss:$0 sm:$0xff] }
 0x601   : > { %2325 = vpow2.f32 %v1326_v22  ;;  %v1430_v25 = vpop.permute.xlu1 %1429 }
 0x607   : > { %v2326_v23 = vpop.eup %2325 }
 0x608   : > { %v1331_v24 = vsel %vm994_vm7, %v2326_v23, 0.0 }
 0x609   : > { %1332 = vadd.xlane.f32.xlu2 %v1331_v24 }
 0x621   : > { %1361 = vrot.lane.b32.xlu2 %v2687_v33, %s2375_s13  ;;  %s2857_s13 = sld [smem:[#allocation10_spill]] (!%p2218_p6) }
 0x62c   : > { %v1454_v28 = vpop.xlane.xlu1 %1453 }
 0x62d   : > { %v1458_v29 = vsub.f32 %v1425_v8, %v1454_v28 }
 0x62f   : > { %v1460_v32 = vmul.f32 1.442695, %v1458_v29 }
 0x631   : > { %2327 = vpow2.f32 %v1460_v32 }
 0x637   : > { %v2328_v35 = vpop.eup %2327 }
 0x638   : > { %v1464_v36 = vsel %vm994_vm7, %v2328_v35, 0.0 }
 0x639   : > { %1465 = vadd.xlane.f32.xlu0 %v1464_v36 }
 0x644   : > { %v1498_v37 = vpop.permute.xlu1 %1497 }
 0x645   : > { %v1503_v38 = vsel %vm1060_vm8, %v1498_v37, 0 }
 0x646   : > { %1512 = vmatpush.bf16.msrb.mxu3 %v1503_v38 }
 0x669   : > { %v1330_v39 = vpop.xlane.xlu2 %1329 }
 0x66a   : > { %2329 = vrcp.f32 %v1330_v39 }
 0x670   : > { %v2330_v33 = vpop.eup %2329 }
 0x671   : > { %v1336_v40 = vmul.f32 %v2330_v33, %v2324_v15 }
 0x673   : > { %v1338_v41 = vpack.c.bf16 %v1336_v40, %v1336_v40 }
 0x675   : > { %2146 = vmatmul.msk.bf16.vlgmr.msra.gmra.mxu1 %vm994_vm7, %v1338_v41  ;;  %v2257_v41 = vld [vmem:[%s2524_s24 + $0x38] sm:$0xff] }
 0x676   : > { %1673 = vmatpush.bf16.msra.mxu1 %v2257_v41 }
 0x67c   : > { %v1333_v31 = vpop.xlane.xlu2 %1332 }
 0x67d   : > { %2331 = vrcp.f32 %v1333_v31  ;;  %v2256_v31 = vld [vmem:[%s2524_s24 + $0x30] sm:$0xff] }
 0x67e   : > { %1674 = vmatpush.bf16.msra.mxu1 %v2256_v31 }
 0x683   : > { %v2332_v42 = vpop.eup %2331 }
 0x684   : > { %v1337_v43 = vmul.f32 %v2332_v42, %v2326_v23  ;;  %v1362_v44 = vpop.permute.xlu2 %1361  ;;  %v1268_v23 = vadd.f32 %v1267_v52, %v1247_v47  ;;  %v2255_v42 = vld [vmem:[%s2524_s24 + $0x28] sm:$0xff] }
 0x685   : > { %v1367_v45 = vsel %vm1060_vm8, %v1362_v44, 0  ;;  %2150 = vmatmul.msk.bf16.vlgmr.msrb.gmra.mxu1 %vm994_vm7, %v1430_v25  ;;  %v2253_v44 = vld [vmem:[%s2524_s24 + $0x18] sm:$0xff] }
 0x686   : > { %v1339_v46 = vpack.c.bf16 %v1337_v43, %v1337_v43  ;;  %1376 = vmatpush.bf16.msrb.mxu2 %v1367_v45  ;;  %1675 = vmatpush.bf16.msra.mxu1 %v2255_v42  ;;  %v2254_v43 = vld [vmem:[%s2524_s24 + $0x20] sm:$0xff]  ;;  %v2252_v45 = vld [vmem:[%s2524_s24 + $0x10] sm:$0xff] }
 0x689   : > { %2147 = vmatmul.msk.bf16.vlgmr.msrb.gmra.mxu2 %vm994_vm7, %v1339_v46  ;;  %v2251_v46 = vld [vmem:[%s2524_s24 + $0x8] sm:$0xff] }
 0x68a   : > { %1676 = vmatpush.bf16.msra.mxu1 %v2254_v43 }
 0x68e   : > { %1677 = vmatpush.bf16.msra.mxu1 %v2253_v44 }
 0x692   : > { %1678 = vmatpush.bf16.msra.mxu1 %v2252_v45 }
 0x696   : > { %1679 = vmatpush.bf16.msra.mxu1 %v2251_v46 }
 0x6ac   : > { %v1466_v63 = vpop.xlane.xlu0 %1465 }
 0x6f2   : > { %v1357_v48 = vpop.f32.mrf.mxu1 }
 0x6fa   : > { %v1359_v49 = vpop.f32.mrf.mxu1 }
 0x6fb   : > { %v2250_v49 = vld [vmem:[%s2524_s24] sm:$0xff] }
 0x6fc   : > { %1680 = vmatpush.bf16.msra.mxu1 %v2250_v49 }
 0x702   : > { %v1448_v50 = vpop.f32.mrf.mxu1 }
 0x703   : > { %v1455_v51 = vsel %vm994_vm7, %v1448_v50, -inf }
 0x704   : > { %1456 = vmax.xlane.f32.xlu2 %v1455_v51  ;;  %v2265_v51 = vld [vmem:[%s2533_s16 + $0x38] sm:$0xff] }
 0x70a   : > { %v1450_v53 = vpop.f32.mrf.mxu1 }
 0x70c   : > { %v1378_v54 = vpop.f32.mrf.mxu2 }
 0x70d   : > { %v1382_v55 = vpack.c.bf16 %v1378_v54, %v1357_v48  ;;  %v2264_v54 = vld [vmem:[%s2533_s16 + $0x30] sm:$0xff] }
 0x70f   : > { %2148 = vmatmul.msk.bf16.vlgmr.msra.gmra.mxu3 %vm994_vm7, %v1382_v55 }
 0x714   : > { %v1380_v56 = vpop.f32.mrf.mxu2 }
 0x777   : > { %v1457_v57 = vpop.xlane.xlu2 %1456 }
 0x778   : > { %v1459_v58 = vsub.f32 %v1448_v50, %v1457_v57 }
 0x77a   : > { %v1462_v59 = vmul.f32 1.442695, %v1459_v58  ;;  %v2263_v58 = vld [vmem:[%s2533_s16 + $0x28] sm:$0xff] }
 0x77c   : > { %2333 = vpow2.f32 %v1462_v59 }
 0x782   : > { %v2334_v60 = vpop.eup %2333 }
 0x783   : > { %v1467_v61 = vsel %vm994_vm7, %v2334_v60, 0.0 }
 0x784   : > { %1468 = vadd.xlane.f32.xlu0 %v1467_v61  ;;  %v2262_v61 = vld [vmem:[%s2533_s16 + $0x20] sm:$0xff] }
 0x792   : > { %v1399_v62 = vpop.f32.mrf.mxu3 }
 0x793   : > { %v1404_v11 = vadd.f32 %v1399_v62, %v1266_v30 }
 0x798   : > { %1476 = vrot.lane.b32.xlu0 %v2639_v34, %s2376_s17  ;;  %v1519_v34 = vld [vmem:[%s2853_s5 + $0xc] sm:$0xf] }
 0x799   : > { %v1524_v12 = vsel %vm1060_vm8, %v1519_v34, 0 }
 0x79a   : > { %1533 = vmatpush.bf16.msrb.mxu0 %v1524_v12  ;;  %v1401_v13 = vpop.f32.mrf.mxu3 }
 0x79b   : > { %v1405_v25 = vadd.f32 %v1401_v13, %v1268_v23  ;;  %v2300_v13 = vld [vmem:[%s682_s19] ss:$0 sm:$0xff] }
 0x79c   : > { %v2301_v23 = vld [vmem:[%s690_s28] ss:$0 sm:$0xff]  ;;  %s2856_s28 = sld [smem:[#allocation9_spill]] (!%p2218_p6) }
 0x7f7   : > { %v1469_v0 = vpop.xlane.xlu0 %1468 }
 0x7f8   : > { %2335 = vrcp.f32 %v1469_v0 }
 0x7f9   : > { %2337 = vrcp.f32 %v1466_v63 }
 0x7fe   : > { %v2336_v16 = vpop.eup %2335 }
 0x7ff   : > { %v1473_v1 = vmul.f32 %v2336_v16, %v2334_v60  ;;  %v2338_v4 = vpop.eup %2337 }
 0x800   : > { %v1472_v5 = vmul.f32 %v2338_v4, %v2328_v35 }
 0x801   : > { %v1475_v2 = vpack.c.bf16 %v1473_v1, %v1473_v1 }
 0x802   : > { %v1474_v10 = vpack.c.bf16 %v1472_v5, %v1472_v5  ;;  %v2299_v5 = vld [vmem:[%s2855_s26] ss:$0 sm:$0xff] }
 0x803   : > { %2152 = vmatmul.msk.bf16.vlgmr.msrb.gmra.mxu3 %vm994_vm7, %v1475_v2 }
 0x80a   : > { %v1477_v8 = vpop.permute.xlu0 %1476 }
 0x80b   : > { %v1482_v9 = vsel %vm1060_vm8, %v1477_v8, 0 }
 0x80c   : > { %1491 = vmatpush.bf16.msra.mxu2 %v1482_v9 }
 0x80f   : > { %2151 = vmatmul.msk.bf16.vlgmr.msra.gmra.mxu2 %vm994_vm7, %v1474_v10 }
 0x810   : > { %1758 = vmatpush.bf16.msrb.mxu2 %v2265_v51 }
 0x814   : > { %1759 = vmatpush.bf16.msrb.mxu2 %v2264_v54 }
 0x818   : > { %1760 = vmatpush.bf16.msrb.mxu2 %v2263_v58 }
 0x81c   : > { %1761 = vmatpush.bf16.msrb.mxu2 %v2262_v61 }
 0x886   : > { %v1514_v14 = vpop.f32.mrf.mxu3 }
 0x88e   : > { %v1516_v15 = vpop.f32.mrf.mxu3 }
 0x892   : > { %v1493_v17 = vpop.f32.mrf.mxu2 }
 0x893   : > { %v1518_v18 = vpack.c.bf16 %v1514_v14, %v1493_v17 }
 0x895   : > { %2153 = vmatmul.msk.bf16.vlgmr.msrb.gmra.mxu0 %vm994_vm7, %v1518_v18 }
 0x89a   : > { %v1495_v19 = vpop.f32.mrf.mxu2 }
 0x89b   : > { %v2261_v19 = vld [vmem:[%s2533_s16 + $0x18] sm:$0xff] }
 0x89c   : > { %1762 = vmatpush.bf16.msrb.mxu2 %v2261_v19 }
 0x912   : > { %v1535_v30 = vpop.f32.mrf.mxu0 }
 0x913   : > { %v1540_v20 = vadd.f32 %v1535_v30, %v1404_v11  ;;  %v2260_v30 = vld [vmem:[%s2533_s16 + $0x10] sm:$0xff] }
 0x914   : > { %1763 = vmatpush.bf16.msrb.mxu2 %v2260_v30 }
 0x915   : > { %v1542_v22 = vadd.f32 %v1540_v20, %v2546_v6  ;;  %v2259_v20 = vld [vmem:[%s2533_s16 + $0x8] sm:$0xff] }
 0x917   : > { %v2746_v24 = vadd.f32 %v2298_v21, %v1542_v22 }
 0x918   : > { %1764 = vmatpush.bf16.msrb.mxu2 %v2259_v20 }
 0x919   : > { %1552 = vadd.xlane.f32.xlu2 %v2746_v24 }
 0x91a   : > { %v1537_v26 = vpop.f32.mrf.mxu0 }
 0x91b   : > { %v1541_v27 = vadd.f32 %v1537_v26, %v1405_v25 }
 0x91d   : > { %v1543_v28 = vadd.f32 %v1541_v27, %v2549_v7 }
 0x91f   : > { %v2750_v29 = vadd.f32 %v2298_v21, %v1543_v28  ;;  %v2258_v21 = vld [vmem:[%s2533_s16] sm:$0xff] }
 0x920   : > { %1765 = vmatpush.bf16.msrb.mxu2 %v2258_v21 }
 0x921   : > { %1554 = vadd.xlane.f32.xlu0 %v2750_v29 }
 0x98c   : > { %v1553_v32 = vpop.xlane.xlu2 %1552 }
 0x98d   : > { %v1556_v35 = vmul.f32 0.03125, %v1553_v32 }
 0x98f   : > { %v1558_v6 = vsub.f32 %v2746_v24, %v1556_v35 }
 0x991   : > { %v1560_v36 = vmul.f32 %v2491_v3, %v1558_v6  ;;  %v2302_v6 = vld [vmem:[%s698_s21] ss:$0 sm:$0xff] }
 0x993   : > { %v1562_v37 = vmul.f32 %v1560_v36, %v1560_v36 }
 0x994   : > { %v1555_v38 = vpop.xlane.xlu0 %1554 }
 0x995   : > { %v1557_v39 = vmul.f32 0.03125, %v1555_v38  ;;  %1564 = vadd.xlane.f32.xlu2 %v1562_v37 }
 0x997   : > { %v1559_v7 = vsub.f32 %v2750_v29, %v1557_v39 }
 0x999   : > { %v1561_v33 = vmul.f32 %v2491_v3, %v1559_v7 }
 0x99b   : > { %v1563_v40 = vmul.f32 %v1561_v33, %v1561_v33 }
 0x99d   : > { %1566 = vadd.xlane.f32.xlu1 %v1563_v40 }
 0xa08   : > { %v1565_v47 = vpop.xlane.xlu2 %1564 }
 0xa09   : > { %v1568_v48 = vmul.f32 0.03125, %v1565_v47 }
 0xa0b   : > { %v1570_v50 = vadd.f32 1e-05, %v1568_v48 }
 0xa0d   : > { %2339 = vrsqrt.f32 %v1570_v50  ;;  %vm1578_vm10 = vweird.f32 %v1570_v50 }
 0xa10   : > { %v1567_v52 = vpop.xlane.xlu1 %1566 }
 0xa11   : > { %v1569_v53 = vmul.f32 0.03125, %v1567_v52 }
 0xa13   : > { %v2340_v55 = vpop.eup %2339  ;;  %v1571_v56 = vadd.f32 1e-05, %v1569_v53 }
 0xa14   : > { %v1573_v57 = vmul.f32 %v2340_v55, %v1570_v50  ;;  %vm1579_vm9 = vweird.f32 %v2340_v55 }
 0xa15   : > { %2341 = vrsqrt.f32 %v1571_v56  ;;  %vm1580_vm11 = vmor %vm1578_vm10, %vm1579_vm9  ;;  %vm1588_vm13 = vweird.f32 %v1571_v56 }
 0xa16   : > { %v1574_v59 = vmul.f32 %v2340_v55, %v1573_v57 }
 0xa18   : > { %v1575_v60 = vmul.f32 0.5, %v1574_v59 }
 0xa1a   : > { %v1576_v62 = vsub.f32 1.5, %v1575_v60 }
 0xa1b   : > { %v2342_v11 = vpop.eup %2341 }
 0xa1c   : > { %v1577_v63 = vmul.f32 %v2340_v55, %v1576_v62  ;;  %v1583_v0 = vmul.f32 %v2342_v11, %v1571_v56  ;;  %vm1589_vm12 = vweird.f32 %v2342_v11 }
 0xa1d   : > { %vm1590_vm14 = vmor %vm1588_vm13, %vm1589_vm12 }
 0xa1e   : > { %v1584_v16 = vmul.f32 %v2342_v11, %v1583_v0  ;;  %v1581_v1 = vsel %vm1580_vm11, %v2340_v55, %v1577_v63 }
 0xa1f   : > { %v1592_v8 = vmul.f32 %v1581_v1, %v1560_v36 }
 0xa20   : > { %v1585_v2 = vmul.f32 0.5, %v1584_v16 }
 0xa21   : > { %v1597_v34 = vmul.f32 %v2299_v5, %v1592_v8 }
 0xa22   : > { %v1586_v4 = vsub.f32 1.5, %v1585_v2 }
 0xa23   : > { %v1602_v15 = vadd.f32 %v2300_v13, %v1597_v34 }
 0xa24   : > { %v1587_v9 = vmul.f32 %v2342_v11, %v1586_v4 }
 0xa26   : > { %v1591_v10 = vsel %vm1590_vm14, %v2342_v11, %v1587_v9 }
 0xa27   : > { %v1593_v12 = vmul.f32 %v1591_v10, %v1561_v33 }
 0xa29   : > { %v1598_v14 = vmul.f32 %v2299_v5, %v1593_v12 }
 0xa2b   : > { %v1603_v17 = vadd.f32 %v2300_v13, %v1598_v14 }
 0xa2d   : > { %v1604_v18 = vpack.c.bf16 %v1603_v17, %v1602_v15 }
 0xa2f   : > { %1681 = vmatmul.bf16.vlgmr.msra.gmra.mxu1 %v1604_v18 }
 0xaac   : > { %v1682_v22 = vpop.f32.mrf.mxu1 }
 0xaad   : > { %v1683_v25 = vadd.f32 %v2301_v23, %v1682_v22 }
 0xaaf   : > { %v1687_v28 = vmax.f32 %v1683_v25, 0.0 }
 0xab4   : > { %v1684_v26 = vpop.f32.mrf.mxu1 }
 0xab5   : > { %v1685_v27 = vadd.f32 %v2301_v23, %v1684_v26 }
 0xab7   : > { %v1688_v32 = vmax.f32 %v1685_v27, 0.0 }
 0xab9   : > { %v1689_v35 = vpack.c.bf16 %v1688_v32, %v1687_v28 }
 0xabb   : > { %1766 = vmatmul.bf16.vlgmr.msrb.gmra.mxu2 %v1689_v35 }
 0xb3e   : > { %v1767_v36 = vpop.f32.mrf.mxu2 }
 0xb3f   : > { %v1768_v37 = vadd.f32 %v2302_v6, %v1767_v36 }
 0xb41   : > { %v1772_v38 = vadd.f32 %v1768_v37, %v2746_v24 }
 0xb43   : > { %1774 = vst [vmem:[#allocation2] sm:$0xff] %v1772_v38 }
 0xb46   : > { %v1769_v39 = vpop.f32.mrf.mxu2 }
 0xb47   : > { %v1770_v7 = vadd.f32 %v2302_v6, %v1769_v39  ;;  %1779 = sbr.rel (%p2218_p6) target bundleno = 3169 (0xc61), region = 88 }
 0xb49   : > { %v1773_v33 = vadd.f32 %v1770_v7, %v2750_v29 }
 0xb4b   : > { %1775 = vst [vmem:[#allocation2 + $0x8] sm:$0xff] %v1773_v33 }
 0xb4c   : > { %1782 = vadd.xlane.f32.xlu0 %v1772_v38  ;;  %v2343_v60 = vld [vmem:[%s2856_s28] ss:$0 sm:$0xff] }
 0xb4d   : > { %v2344_v63 = vld [vmem:[%s2857_s13] ss:$0 sm:$0xff] }
 0xb54   : > { %1784 = vadd.xlane.f32.xlu0 %v1773_v33 }
 0xbbf   : > { %v1783_v40 = vpop.xlane.xlu0 %1782 }
 0xbc0   : > { %v1786_v41 = vmul.f32 0.03125, %v1783_v40 }
 0xbc2   : > { %v1788_v31 = vsub.f32 %v1772_v38, %v1786_v41 }
 0xbc4   : > { %v1790_v42 = vmul.f32 %v2491_v3, %v1788_v31 }
 0xbc6   : > { %v1792_v43 = vmul.f32 %v1790_v42, %v1790_v42 }
 0xbc7   : > { %v1785_v44 = vpop.xlane.xlu0 %1784 }
 0xbc8   : > { %v1787_v45 = vmul.f32 0.03125, %v1785_v44  ;;  %1794 = vadd.xlane.f32.xlu1 %v1792_v43 }
 0xbca   : > { %v1789_v24 = vsub.f32 %v1773_v33, %v1787_v45 }
 0xbcc   : > { %v1791_v46 = vmul.f32 %v2491_v3, %v1789_v24 }
 0xbce   : > { %v1793_v47 = vmul.f32 %v1791_v46, %v1791_v46 }
 0xbd0   : > { %1796 = vadd.xlane.f32.xlu1 %v1793_v47 }
 0xc3b   : > { %v1795_v29 = vpop.xlane.xlu1 %1794 }
 0xc3c   : > { %v1798_v48 = vmul.f32 0.03125, %v1795_v29 }
 0xc3e   : > { %v1800_v49 = vadd.f32 1e-05, %v1798_v48 }
 0xc40   : > { %2345 = vrsqrt.f32 %v1800_v49  ;;  %vm1808_vm0 = vweird.f32 %v1800_v49 }
 0xc43   : > { %v1797_v50 = vpop.xlane.xlu1 %1796 }
 0xc44   : > { %v1799_v51 = vmul.f32 0.03125, %v1797_v50 }
 0xc46   : > { %v2346_v52 = vpop.eup %2345  ;;  %v1801_v53 = vadd.f32 1e-05, %v1799_v51 }
 0xc47   : > { %v1803_v54 = vmul.f32 %v2346_v52, %v1800_v49  ;;  %vm1809_vm15 = vweird.f32 %v2346_v52 }
 0xc48   : > { %2347 = vrsqrt.f32 %v1801_v53  ;;  %vm1810_vm1 = vmor %vm1808_vm0, %vm1809_vm15  ;;  %vm1818_vm3 = vweird.f32 %v1801_v53 }
 0xc49   : > { %v1804_v55 = vmul.f32 %v2346_v52, %v1803_v54 }
 0xc4b   : > { %v1805_v56 = vmul.f32 0.5, %v1804_v55 }
 0xc4d   : > { %v1806_v57 = vsub.f32 1.5, %v1805_v56 }
 0xc4e   : > { %v2348_v58 = vpop.eup %2347 }
 0xc4f   : > { %v1807_v59 = vmul.f32 %v2346_v52, %v1806_v57  ;;  %v1813_v3 = vmul.f32 %v2348_v58, %v1801_v53  ;;  %vm1819_vm2 = vweird.f32 %v2348_v58 }
 0xc50   : > { %vm1820_vm4 = vmor %vm1818_vm3, %vm1819_vm2 }
 0xc51   : > { %v1811_v61 = vsel %vm1810_vm1, %v2346_v52, %v1807_v59  ;;  %v1814_v62 = vmul.f32 %v2348_v58, %v1813_v3 }
 0xc52   : > { %v1822_v11 = vmul.f32 %v1811_v61, %v1790_v42 }
 0xc53   : > { %v1815_v0 = vmul.f32 0.5, %v1814_v62 }
 0xc54   : > { %v1827_v16 = vmul.f32 %v2343_v60, %v1822_v11 }
 0xc55   : > { %v1816_v1 = vsub.f32 1.5, %v1815_v0 }
 0xc56   : > { %v1832_v2 = vadd.f32 %v2344_v63, %v1827_v16 }
 0xc57   : > { %v1817_v4 = vmul.f32 %v2348_v58, %v1816_v1 }
 0xc58   : > { %1834 = vst [vmem:[%s2858_s23] sm:$0xff] %v1832_v2 }
 0xc59   : > { %v1821_v5 = vsel %vm1820_vm4, %v2348_v58, %v1817_v4 }
 0xc5a   : > { %v1823_v8 = vmul.f32 %v1821_v5, %v1791_v46 }
 0xc5c   : > { %v1828_v9 = vmul.f32 %v2343_v60, %v1823_v8 }
 0xc5e   : > { %v1833_v10 = vadd.f32 %v2344_v63, %v1828_v9 }
 0xc60   : > { %1835 = vst [vmem:[%s2858_s23 + $0x8] sm:$0xff] %v1833_v10 }
 0xc61 PF: > { %s2859_s24 = sld [smem:[#allocation4_spill]] }
 0xc62   : > { %s2860_s18 = sld [smem:[#allocation3_spill]] }
 0xc63   : > { %s2861_s19 = sld [smem:[#allocation5_spill]] }
 0xc67   : > { %s25_s20 = sadd.s32 1, %s2859_s24  }
 0xc68   : > { %p22_p7 = scmp.ge.s32.totalorder %s25_s20, 4  }
 0xc6a   :  { %24 = sbr.rel (!%p22_p7) target bundleno = 6 (0x6), region = 154 }

</bundles_post_ra>
